<compile_context>
chip_gen: v7x
topology: tpu7x:2x2x1
jax: 0.10.0
libtpu: 0.0.40
codegen_flags: <defaults>
</compile_context>

<pallas_src>
import math
import functools

import jax
import jax.numpy as jnp
from jax.experimental import pallas as pl
from jax.experimental.pallas import tpu as pltpu


def _encode_block_kernel(x_ref, g_ref,
                         wqkv_ref, bqkv_ref, wp_ref, bp_ref,
                         ln1_g_ref, ln1_b_ref,
                         w1_ref, b1_ref, w2_ref, b2_ref,
                         ln2_g_ref, ln2_b_ref,
                         out_ref, att_ref,
                         *, n_head):
    Bblk, L, D = x_ref.shape
    H = n_head
    hd = D // H
    N = Bblk * L
    scale = 1.0 / math.sqrt(hd)

    x = x_ref[...].reshape(N, D)        # flattened (batch*token, feature) slab
    graph = g_ref[...]                  # (Bblk, L, L)

    def layer_norm(a, g_r, b_r):
        # fused one-pass statistics: var = E[a^2] - mean^2 (halves the lane reductions)
        mu = jnp.mean(a, axis=-1, keepdims=True)
        ms = jnp.mean(a * a, axis=-1, keepdims=True)
        inv = jax.lax.rsqrt(ms - mu * mu + 1e-5)
        return (a - mu) * inv * g_r[...] + b_r[...]

    # ---- fused Q/K/V projection: one MXU push with 3*D output lanes ----
    qkv = jnp.dot(x, wqkv_ref[...], preferred_element_type=jnp.float32) + bqkv_ref[...]

    # ---- split heads once into a single (Bblk*H, L, hd) batch (batch index = b*H + h) ----
    def heads(col_off):
        parts = [qkv[:, col_off + h * hd: col_off + (h + 1) * hd].reshape(Bblk, 1, L, hd)
                 for h in range(H)]
        return jnp.concatenate(parts, axis=1).reshape(Bblk * H, L, hd)

    q = heads(0)
    k = heads(D)
    v = heads(2 * D)

    # ---- graph-weighted logits: one batched contraction over all heads ----
    logits = jnp.einsum("bld,bmd->blm", q, k,
                        preferred_element_type=jnp.float32) * scale
    logits = logits.reshape(Bblk, H, L, L) * graph[:, None, :, :]

    # ---- one vectorized softmax over all heads/rows, single att store ----
    logits = logits - jnp.max(logits, axis=-1, keepdims=True)
    p = jnp.exp(logits)
    denom = jnp.sum(p, axis=-1, keepdims=True)
    inv = pl.reciprocal(denom, approx=True)      # EUP slot (otherwise idle)
    inv = inv * (2.0 - denom * inv)              # one Newton step -> keeps 1e-4 accuracy
    att = p * inv                                # (Bblk, H, L, L)
    att_ref[...] = att.astype(att_ref.dtype)

    # ---- att @ V (batched) then output projection accumulated per head (no concat) ----
    y = jnp.einsum("blm,bmd->bld", att.reshape(Bblk * H, L, L), v,
                   preferred_element_type=jnp.float32)
    y = y.reshape(Bblk, H, L, hd)
    yproj = jnp.dot(y[:, 0].reshape(N, hd), wp_ref[0],
                    preferred_element_type=jnp.float32)
    for h in range(1, H):
        yproj = yproj + jnp.dot(y[:, h].reshape(N, hd), wp_ref[h],
                                preferred_element_type=jnp.float32)
    yproj = yproj + bp_ref[...]

    # ---- residual + LN1 ----
    x1 = layer_norm(x + yproj, ln1_g_ref, ln1_b_ref)

    # ---- MLP: Linear -> exact GELU (erf, matches nn.GELU) -> Linear ----
    hmid = jnp.dot(x1, w1_ref[...], preferred_element_type=jnp.float32) + b1_ref[...]
    hmid = 0.5 * hmid * (1.0 + jax.lax.erf(hmid * (1.0 / math.sqrt(2.0))))
    m = jnp.dot(hmid, w2_ref[...], preferred_element_type=jnp.float32) + b2_ref[...]

    # ---- residual + LN2 ----
    out = layer_norm(x1 + m, ln2_g_ref, ln2_b_ref)
    out_ref[...] = out.reshape(Bblk, L, D).astype(out_ref.dtype)


def encode_block_forward(x, graph, params, n_head):
    """x: (B, L, D) f32, graph: (B, L, L) f32. Returns (out, att, mask_logits)."""
    B, L, D = x.shape
    H = n_head
    hd = D // H

    # Batch blocking: fold batch elements into each grid step to amortize the
    # ~0.35 us per-step pipeline overhead, but keep >= 2 grid steps so both
    # TensorCores of a v7x chip get work (dimension_semantics="parallel").
    if B >= 2 and B % 2 == 0:
        bblk = B // 2
    else:
        bblk = 1
    n_steps = B // bblk
    assert n_steps * bblk == B

    # Host-side (free) weight repacking.
    w_qkv = jnp.concatenate([params["wq"], params["wk"], params["wv"]], axis=1)  # (D, 3D)
    b_qkv = jnp.concatenate([params["bq"], params["bk"], params["bv"]], axis=1)  # (1, 3D)
    wp3 = params["wp"].reshape(H, hd, D)                                          # head-blocked proj

    weight_args = (
        w_qkv, b_qkv, wp3, params["bp"],
        params["ln1_g"], params["ln1_b"],
        params["w1"], params["b1"], params["w2"], params["b2"],
        params["ln2_g"], params["ln2_b"],
    )

    def _const_spec(arr):
        # grid-invariant full-array block: fetched once, stays resident in VMEM
        return pl.BlockSpec(arr.shape, lambda b, nd=arr.ndim: (0,) * nd)

    weight_specs = [_const_spec(w) for w in weight_args]

    out, att = pl.pallas_call(
        functools.partial(_encode_block_kernel, n_head=n_head),
        out_shape=(
            jax.ShapeDtypeStruct((B, L, D), jnp.float32),
            jax.ShapeDtypeStruct((B, n_head, L, L), jnp.float32),
        ),
        grid_spec=pltpu.PrefetchScalarGridSpec(
            num_scalar_prefetch=0,
            grid=(n_steps,),
            in_specs=[
                pl.BlockSpec((bblk, L, D), lambda b: (b, 0, 0)),
                pl.BlockSpec((bblk, L, L), lambda b: (b, 0, 0)),
            ] + weight_specs,
            out_specs=[
                pl.BlockSpec((bblk, L, D), lambda b: (b, 0, 0)),
                pl.BlockSpec((bblk, n_head, L, L), lambda b: (b, 0, 0, 0)),
            ],
        ),
        compiler_params=pltpu.CompilerParams(
            dimension_semantics=("parallel",),
            # explicit, safe on v5e/v6e (128 MiB) and v7x (64 MiB) physical VMEM
            vmem_limit_bytes=48 * 1024 * 1024,
        ),
    )(x, graph, *weight_args)

    return out, att, params["mask_logits"]


def make_params(key, n_embd, n_head, n_agent):
    """Deterministic synthetic init (PyTorch uses orthogonal init; here scaled normal)."""
    ks = jax.random.split(key, 6)
    scale = 0.05
    p = {}
    # Linear weights stored as (in, out) so the kernel computes x @ W + b.
    p["wq"] = scale * jax.random.normal(ks[0], (n_embd, n_embd), jnp.float32)
    p["wk"] = scale * jax.random.normal(ks[1], (n_embd, n_embd), jnp.float32)
    p["wv"] = scale * jax.random.normal(ks[2], (n_embd, n_embd), jnp.float32)
    p["wp"] = scale * jax.random.normal(ks[3], (n_embd, n_embd), jnp.float32)
    p["w1"] = scale * jax.random.normal(ks[4], (n_embd, n_embd), jnp.float32)
    p["w2"] = scale * jax.random.normal(ks[5], (n_embd, n_embd), jnp.float32)
    for name in ("bq", "bk", "bv", "bp", "b1", "b2", "ln1_b", "ln2_b"):
        p[name] = jnp.zeros((1, n_embd), jnp.float32)      # biases init to 0
    p["ln1_g"] = jnp.ones((1, n_embd), jnp.float32)         # LayerNorm weight init 1
    p["ln2_g"] = jnp.ones((1, n_embd), jnp.float32)
    # SelfAttention mask_logits parameter (fixed_masked=False); returned unchanged.
    p["mask_logits"] = jnp.zeros((1, n_head, n_agent, n_agent), jnp.float32)
    return p


def _reference(x, graph, params, n_head):
    """Plain-JAX reference of the same forward pass (correctness check)."""
    B, L, D = x.shape
    hd = D // n_head

    def lin(a, w, b):
        return a @ w + b

    def split_heads(a):  # (B, L, D) -> (B, H, L, hd)
        return a.reshape(B, L, n_head, hd).transpose(0, 2, 1, 3)

    q = split_heads(lin(x, params["wq"], params["bq"]))
    k = split_heads(lin(x, params["wk"], params["bk"]))
    v = split_heads(lin(x, params["wv"], params["bv"]))
    att = jnp.einsum("bhqd,bhkd->bhqk", q, k) / math.sqrt(hd)
    att = att * graph[:, None, :, :]
    att = jax.nn.softmax(att, axis=-1)
    y = jnp.einsum("bhqk,bhkd->bhqd", att, v).transpose(0, 2, 1, 3).reshape(B, L, D)
    y = lin(y, params["wp"], params["bp"])

    def ln(a, g, b):
        mu = a.mean(-1, keepdims=True)
        var = ((a - mu) ** 2).mean(-1, keepdims=True)
        return (a - mu) / jnp.sqrt(var + 1e-5) * g + b

    x1 = ln(x + y, params["ln1_g"], params["ln1_b"])
    h = lin(x1, params["w1"], params["b1"])
    h = jax.nn.gelu(h, approximate=False)
    m = lin(h, params["w2"], params["b2"])
    return ln(x1 + m, params["ln2_g"], params["ln2_b"]), att


if __name__ == "__main__":
    B, n_agent, n_embd, n_head = 2, 8, 32, 4
    L = n_agent

    key = jax.random.PRNGKey(0)
    k_x, k_g, k_p = jax.random.split(key, 3)
    x = jax.random.normal(k_x, (B, L, n_embd), jnp.float32)
    graph = jax.random.uniform(k_g, (B, L, L), jnp.float32)
    params = make_params(k_p, n_embd, n_head, n_agent)

    out, att, mask = encode_block_forward(x, graph, params, n_head)
    out, att, mask = jax.block_until_ready((out, att, mask))

    ref_out, ref_att = _reference(x, graph, params, n_head)
    assert jnp.allclose(out, ref_out, rtol=1e-4, atol=1e-4), "output mismatch"
    assert jnp.allclose(att, ref_att, rtol=1e-4, atol=1e-4), "attention mismatch"
    assert mask.shape == (1, n_head, n_agent, n_agent)

    print("KERNEL_OK")
</pallas_src>

<mosaic_0001>
module attributes {stable_mosaic.version = 11 : i64} {
  func.func @_encode_block_kernel(%arg0: i32, %arg1: memref<1x8x32xf32, #tpu.memory_space<vmem>>, %arg2: memref<1x8x8xf32, #tpu.memory_space<vmem>>, %arg3: memref<32x96xf32, #tpu.memory_space<vmem>>, %arg4: memref<1x96xf32, #tpu.memory_space<vmem>>, %arg5: memref<4x8x32xf32, #tpu.memory_space<vmem>>, %arg6: memref<1x32xf32, #tpu.memory_space<vmem>>, %arg7: memref<1x32xf32, #tpu.memory_space<vmem>>, %arg8: memref<1x32xf32, #tpu.memory_space<vmem>>, %arg9: memref<32x32xf32, #tpu.memory_space<vmem>>, %arg10: memref<1x32xf32, #tpu.memory_space<vmem>>, %arg11: memref<32x32xf32, #tpu.memory_space<vmem>>, %arg12: memref<1x32xf32, #tpu.memory_space<vmem>>, %arg13: memref<1x32xf32, #tpu.memory_space<vmem>>, %arg14: memref<1x32xf32, #tpu.memory_space<vmem>>, %arg15: memref<1x8x32xf32, #tpu.memory_space<vmem>>, %arg16: memref<1x4x8x8xf32, #tpu.memory_space<vmem>>) attributes {dimension_semantics = [#tpu.dimension_semantics<parallel>], iteration_bounds = array<i64: 2>, scalar_prefetch = 0 : i64, scratch_operands = 0 : i64, tpu.core_type = #tpu.core_type<tc>, window_params = [{transform_indices = @transform_0, window_bounds = array<i64: 1, 8, 32>}, {transform_indices = @transform_1, window_bounds = array<i64: 1, 8, 8>}, {pipeline_mode = #tpu.pipeline_mode<synchronous>, transform_indices = @transform_2, window_bounds = array<i64: 32, 96>}, {pipeline_mode = #tpu.pipeline_mode<synchronous>, transform_indices = @transform_3, window_bounds = array<i64: 1, 96>}, {pipeline_mode = #tpu.pipeline_mode<synchronous>, transform_indices = @transform_4, window_bounds = array<i64: 4, 8, 32>}, {pipeline_mode = #tpu.pipeline_mode<synchronous>, transform_indices = @transform_5, window_bounds = array<i64: 1, 32>}, {pipeline_mode = #tpu.pipeline_mode<synchronous>, transform_indices = @transform_6, window_bounds = array<i64: 1, 32>}, {pipeline_mode = #tpu.pipeline_mode<synchronous>, transform_indices = @transform_7, window_bounds = array<i64: 1, 32>}, {pipeline_mode = #tpu.pipeline_mode<synchronous>, transform_indices = @transform_8, window_bounds = array<i64: 32, 32>}, {pipeline_mode = #tpu.pipeline_mode<synchronous>, transform_indices = @transform_9, window_bounds = array<i64: 1, 32>}, {pipeline_mode = #tpu.pipeline_mode<synchronous>, transform_indices = @transform_10, window_bounds = array<i64: 32, 32>}, {pipeline_mode = #tpu.pipeline_mode<synchronous>, transform_indices = @transform_11, window_bounds = array<i64: 1, 32>}, {pipeline_mode = #tpu.pipeline_mode<synchronous>, transform_indices = @transform_12, window_bounds = array<i64: 1, 32>}, {pipeline_mode = #tpu.pipeline_mode<synchronous>, transform_indices = @transform_13, window_bounds = array<i64: 1, 32>}, {transform_indices = @transform_14, window_bounds = array<i64: 1, 8, 32>}, {transform_indices = @transform_15, window_bounds = array<i64: 1, 4, 8, 8>}]} {
    %c0 = arith.constant 0 : index
    %c0_0 = arith.constant 0 : index
    %c0_1 = arith.constant 0 : index
    %0 = vector.load %arg1[%c0, %c0_0, %c0_1] : memref<1x8x32xf32, #tpu.memory_space<vmem>>, vector<1x8x32xf32>
    %1 = vector.shape_cast %0 : vector<1x8x32xf32> to vector<8x32xf32>
    %c0_2 = arith.constant 0 : index
    %c0_3 = arith.constant 0 : index
    %c0_4 = arith.constant 0 : index
    %2 = vector.load %arg2[%c0_2, %c0_3, %c0_4] : memref<1x8x8xf32, #tpu.memory_space<vmem>>, vector<1x8x8xf32>
    %c0_5 = arith.constant 0 : index
    %c0_6 = arith.constant 0 : index
    %3 = vector.load %arg3[%c0_5, %c0_6] : memref<32x96xf32, #tpu.memory_space<vmem>>, vector<32x96xf32>
    %cst = arith.constant dense<0.000000e+00> : vector<8x96xf32>
    %4 = tpu.matmul %1, %3, %cst {dimension_numbers = #tpu.dot_dimension_numbers<[1], [0], [0], [1], [0, 0, 1, 1], [], []>} : vector<8x32xf32>, vector<32x96xf32>, vector<8x96xf32> -> vector<8x96xf32>
    %c0_7 = arith.constant 0 : index
    %c0_8 = arith.constant 0 : index
    %5 = vector.load %arg4[%c0_7, %c0_8] : memref<1x96xf32, #tpu.memory_space<vmem>>, vector<1x96xf32>
    %6 = vector.broadcast %5 : vector<1x96xf32> to vector<8x96xf32>
    %7 = arith.addf %4, %6 : vector<8x96xf32>
    %8 = vector.extract_strided_slice %7 {offsets = [0, 0], sizes = [8, 8], strides = [1, 1]} : vector<8x96xf32> to vector<8x8xf32>
    %9 = vector.shape_cast %8 : vector<8x8xf32> to vector<1x1x8x8xf32>
    %10 = vector.extract_strided_slice %7 {offsets = [0, 8], sizes = [8, 8], strides = [1, 1]} : vector<8x96xf32> to vector<8x8xf32>
    %11 = vector.shape_cast %10 : vector<8x8xf32> to vector<1x1x8x8xf32>
    %12 = vector.extract_strided_slice %7 {offsets = [0, 16], sizes = [8, 8], strides = [1, 1]} : vector<8x96xf32> to vector<8x8xf32>
    %13 = vector.shape_cast %12 : vector<8x8xf32> to vector<1x1x8x8xf32>
    %14 = vector.extract_strided_slice %7 {offsets = [0, 24], sizes = [8, 8], strides = [1, 1]} : vector<8x96xf32> to vector<8x8xf32>
    %15 = vector.shape_cast %14 : vector<8x8xf32> to vector<1x1x8x8xf32>
    %16 = tpu.concatenate %9, %11, %13, %15 in 1 : vector<1x1x8x8xf32>, vector<1x1x8x8xf32>, vector<1x1x8x8xf32>, vector<1x1x8x8xf32> -> vector<1x4x8x8xf32>
    %17 = vector.shape_cast %16 : vector<1x4x8x8xf32> to vector<4x8x8xf32>
    %18 = vector.extract_strided_slice %7 {offsets = [0, 32], sizes = [8, 8], strides = [1, 1]} : vector<8x96xf32> to vector<8x8xf32>
    %19 = vector.shape_cast %18 : vector<8x8xf32> to vector<1x1x8x8xf32>
    %20 = vector.extract_strided_slice %7 {offsets = [0, 40], sizes = [8, 8], strides = [1, 1]} : vector<8x96xf32> to vector<8x8xf32>
    %21 = vector.shape_cast %20 : vector<8x8xf32> to vector<1x1x8x8xf32>
    %22 = vector.extract_strided_slice %7 {offsets = [0, 48], sizes = [8, 8], strides = [1, 1]} : vector<8x96xf32> to vector<8x8xf32>
    %23 = vector.shape_cast %22 : vector<8x8xf32> to vector<1x1x8x8xf32>
    %24 = vector.extract_strided_slice %7 {offsets = [0, 56], sizes = [8, 8], strides = [1, 1]} : vector<8x96xf32> to vector<8x8xf32>
    %25 = vector.shape_cast %24 : vector<8x8xf32> to vector<1x1x8x8xf32>
    %26 = tpu.concatenate %19, %21, %23, %25 in 1 : vector<1x1x8x8xf32>, vector<1x1x8x8xf32>, vector<1x1x8x8xf32>, vector<1x1x8x8xf32> -> vector<1x4x8x8xf32>
    %27 = vector.shape_cast %26 : vector<1x4x8x8xf32> to vector<4x8x8xf32>
    %28 = vector.extract_strided_slice %7 {offsets = [0, 64], sizes = [8, 8], strides = [1, 1]} : vector<8x96xf32> to vector<8x8xf32>
    %29 = vector.shape_cast %28 : vector<8x8xf32> to vector<1x1x8x8xf32>
    %30 = vector.extract_strided_slice %7 {offsets = [0, 72], sizes = [8, 8], strides = [1, 1]} : vector<8x96xf32> to vector<8x8xf32>
    %31 = vector.shape_cast %30 : vector<8x8xf32> to vector<1x1x8x8xf32>
    %32 = vector.extract_strided_slice %7 {offsets = [0, 80], sizes = [8, 8], strides = [1, 1]} : vector<8x96xf32> to vector<8x8xf32>
    %33 = vector.shape_cast %32 : vector<8x8xf32> to vector<1x1x8x8xf32>
    %34 = vector.extract_strided_slice %7 {offsets = [0, 88], sizes = [8, 8], strides = [1, 1]} : vector<8x96xf32> to vector<8x8xf32>
    %35 = vector.shape_cast %34 : vector<8x8xf32> to vector<1x1x8x8xf32>
    %36 = tpu.concatenate %29, %31, %33, %35 in 1 : vector<1x1x8x8xf32>, vector<1x1x8x8xf32>, vector<1x1x8x8xf32>, vector<1x1x8x8xf32> -> vector<1x4x8x8xf32>
    %37 = vector.shape_cast %36 : vector<1x4x8x8xf32> to vector<4x8x8xf32>
    "tpu.trace_start"() <{level = 10 : i32, message = "bld,bmd->blm"}> : () -> ()
    %cst_9 = arith.constant dense<0.000000e+00> : vector<4x8x8xf32>
    %38 = tpu.matmul %17, %27, %cst_9 {dimension_numbers = #tpu.dot_dimension_numbers<[2], [2], [1], [1], [0, 0, 0, 1, 1, 1], [0], [0]>} : vector<4x8x8xf32>, vector<4x8x8xf32>, vector<4x8x8xf32> -> vector<4x8x8xf32>
    "tpu.trace_stop"() : () -> ()
    %cst_10 = arith.constant 0.353553385 : f32
    %39 = vector.broadcast %cst_10 : f32 to vector<4x8x8xf32>
    %40 = arith.mulf %38, %39 : vector<4x8x8xf32>
    %41 = vector.shape_cast %40 : vector<4x8x8xf32> to vector<1x4x8x8xf32>
    %42 = vector.shape_cast %2 : vector<1x8x8xf32> to vector<1x1x8x8xf32>
    %43 = vector.broadcast %42 : vector<1x1x8x8xf32> to vector<1x4x8x8xf32>
    %44 = arith.mulf %41, %43 : vector<1x4x8x8xf32>
    %cst_11 = arith.constant dense<0xFF800000> : vector<1x4x8xf32>
    %45 = vector.multi_reduction <maximumf>, %44, %cst_11 [3] : vector<1x4x8x8xf32> to vector<1x4x8xf32>
    %46 = vector.shape_cast %45 : vector<1x4x8xf32> to vector<1x4x8x1xf32>
    %47 = vector.broadcast %46 : vector<1x4x8x1xf32> to vector<1x4x8x8xf32>
    %48 = arith.subf %44, %47 : vector<1x4x8x8xf32>
    %49 = math.exp %48 : vector<1x4x8x8xf32>
    %cst_12 = arith.constant dense<0.000000e+00> : vector<1x4x8xf32>
    %50 = vector.multi_reduction <add>, %49, %cst_12 [3] : vector<1x4x8x8xf32> to vector<1x4x8xf32>
    %51 = vector.shape_cast %50 : vector<1x4x8xf32> to vector<1x4x8x1xf32>
    %52 = tpu.reciprocal %51 {approx = true} : vector<1x4x8x1xf32> -> vector<1x4x8x1xf32>
    %53 = arith.mulf %51, %52 : vector<1x4x8x1xf32>
    %cst_13 = arith.constant 2.000000e+00 : f32
    %54 = vector.broadcast %cst_13 : f32 to vector<1x4x8x1xf32>
    %55 = arith.subf %54, %53 : vector<1x4x8x1xf32>
    %56 = arith.mulf %52, %55 : vector<1x4x8x1xf32>
    %57 = vector.broadcast %56 : vector<1x4x8x1xf32> to vector<1x4x8x8xf32>
    %58 = arith.mulf %49, %57 : vector<1x4x8x8xf32>
    %c0_14 = arith.constant 0 : index
    %c0_15 = arith.constant 0 : index
    %c0_16 = arith.constant 0 : index
    %c0_17 = arith.constant 0 : index
    %59 = vector.load %arg16[%c0_14, %c0_15, %c0_16, %c0_17] : memref<1x4x8x8xf32, #tpu.memory_space<vmem>>, vector<1x4x8x8xf32>
    tpu.vector_store %arg16[%c0_14, %c0_15, %c0_16, %c0_17], %58 {strides = array<i32>} : memref<1x4x8x8xf32, #tpu.memory_space<vmem>>, vector<1x4x8x8xf32>,
    %60 = vector.shape_cast %58 : vector<1x4x8x8xf32> to vector<4x8x8xf32>
    "tpu.trace_start"() <{level = 10 : i32, message = "blm,bmd->bld"}> : () -> ()
    %cst_18 = arith.constant dense<0.000000e+00> : vector<4x8x8xf32>
    %61 = tpu.matmul %60, %37, %cst_18 {dimension_numbers = #tpu.dot_dimension_numbers<[2], [1], [1], [2], [0, 0, 0, 1, 1, 2], [0], [0]>} : vector<4x8x8xf32>, vector<4x8x8xf32>, vector<4x8x8xf32> -> vector<4x8x8xf32>
    "tpu.trace_stop"() : () -> ()
    %62 = vector.shape_cast %61 : vector<4x8x8xf32> to vector<1x4x8x8xf32>
    %63 = vector.extract_strided_slice %62 {offsets = [0, 0, 0, 0], sizes = [1, 1, 8, 8], strides = [1, 1, 1, 1]} : vector<1x4x8x8xf32> to vector<1x1x8x8xf32>
    %64 = vector.shape_cast %63 : vector<1x1x8x8xf32> to vector<1x8x8xf32>
    %65 = vector.shape_cast %64 : vector<1x8x8xf32> to vector<8x8xf32>
    %c0_19 = arith.constant 0 : index
    %c0_20 = arith.constant 0 : index
    %c0_21 = arith.constant 0 : index
    %66 = vector.load %arg5[%c0_19, %c0_20, %c0_21] : memref<4x8x32xf32, #tpu.memory_space<vmem>>, vector<1x8x32xf32>
    %67 = vector.shape_cast %66 : vector<1x8x32xf32> to vector<8x32xf32>
    %cst_22 = arith.constant dense<0.000000e+00> : vector<8x32xf32>
    %68 = tpu.matmul %65, %67, %cst_22 {dimension_numbers = #tpu.dot_dimension_numbers<[1], [0], [0], [1], [0, 0, 1, 1], [], []>} : vector<8x8xf32>, vector<8x32xf32>, vector<8x32xf32> -> vector<8x32xf32>
    %69 = vector.extract_strided_slice %62 {offsets = [0, 1, 0, 0], sizes = [1, 1, 8, 8], strides = [1, 1, 1, 1]} : vector<1x4x8x8xf32> to vector<1x1x8x8xf32>
    %70 = vector.shape_cast %69 : vector<1x1x8x8xf32> to vector<1x8x8xf32>
    %71 = vector.shape_cast %70 : vector<1x8x8xf32> to vector<8x8xf32>
    %c1 = arith.constant 1 : index
    %c0_23 = arith.constant 0 : index
    %c0_24 = arith.constant 0 : index
    %72 = vector.load %arg5[%c1, %c0_23, %c0_24] : memref<4x8x32xf32, #tpu.memory_space<vmem>>, vector<1x8x32xf32>
    %73 = vector.shape_cast %72 : vector<1x8x32xf32> to vector<8x32xf32>
    %cst_25 = arith.constant dense<0.000000e+00> : vector<8x32xf32>
    %74 = tpu.matmul %71, %73, %cst_25 {dimension_numbers = #tpu.dot_dimension_numbers<[1], [0], [0], [1], [0, 0, 1, 1], [], []>} : vector<8x8xf32>, vector<8x32xf32>, vector<8x32xf32> -> vector<8x32xf32>
    %75 = arith.addf %68, %74 : vector<8x32xf32>
    %76 = vector.extract_strided_slice %62 {offsets = [0, 2, 0, 0], sizes = [1, 1, 8, 8], strides = [1, 1, 1, 1]} : vector<1x4x8x8xf32> to vector<1x1x8x8xf32>
    %77 = vector.shape_cast %76 : vector<1x1x8x8xf32> to vector<1x8x8xf32>
    %78 = vector.shape_cast %77 : vector<1x8x8xf32> to vector<8x8xf32>
    %c2 = arith.constant 2 : index
    %c0_26 = arith.constant 0 : index
    %c0_27 = arith.constant 0 : index
    %79 = vector.load %arg5[%c2, %c0_26, %c0_27] : memref<4x8x32xf32, #tpu.memory_space<vmem>>, vector<1x8x32xf32>
    %80 = vector.shape_cast %79 : vector<1x8x32xf32> to vector<8x32xf32>
    %cst_28 = arith.constant dense<0.000000e+00> : vector<8x32xf32>
    %81 = tpu.matmul %78, %80, %cst_28 {dimension_numbers = #tpu.dot_dimension_numbers<[1], [0], [0], [1], [0, 0, 1, 1], [], []>} : vector<8x8xf32>, vector<8x32xf32>, vector<8x32xf32> -> vector<8x32xf32>
    %82 = arith.addf %75, %81 : vector<8x32xf32>
    %83 = vector.extract_strided_slice %62 {offsets = [0, 3, 0, 0], sizes = [1, 1, 8, 8], strides = [1, 1, 1, 1]} : vector<1x4x8x8xf32> to vector<1x1x8x8xf32>
    %84 = vector.shape_cast %83 : vector<1x1x8x8xf32> to vector<1x8x8xf32>
    %85 = vector.shape_cast %84 : vector<1x8x8xf32> to vector<8x8xf32>
    %c3 = arith.constant 3 : index
    %c0_29 = arith.constant 0 : index
    %c0_30 = arith.constant 0 : index
    %86 = vector.load %arg5[%c3, %c0_29, %c0_30] : memref<4x8x32xf32, #tpu.memory_space<vmem>>, vector<1x8x32xf32>
    %87 = vector.shape_cast %86 : vector<1x8x32xf32> to vector<8x32xf32>
    %cst_31 = arith.constant dense<0.000000e+00> : vector<8x32xf32>
    %88 = tpu.matmul %85, %87, %cst_31 {dimension_numbers = #tpu.dot_dimension_numbers<[1], [0], [0], [1], [0, 0, 1, 1], [], []>} : vector<8x8xf32>, vector<8x32xf32>, vector<8x32xf32> -> vector<8x32xf32>
    %89 = arith.addf %82, %88 : vector<8x32xf32>
    %c0_32 = arith.constant 0 : index
    %c0_33 = arith.constant 0 : index
    %90 = vector.load %arg6[%c0_32, %c0_33] : memref<1x32xf32, #tpu.memory_space<vmem>>, vector<1x32xf32>
    %91 = vector.broadcast %90 : vector<1x32xf32> to vector<8x32xf32>
    %92 = arith.addf %89, %91 : vector<8x32xf32>
    %93 = arith.addf %1, %92 : vector<8x32xf32>
    %cst_34 = arith.constant dense<0.000000e+00> : vector<8xf32>
    %94 = vector.multi_reduction <add>, %93, %cst_34 [1] : vector<8x32xf32> to vector<8xf32>
    %95 = vector.shape_cast %94 : vector<8xf32> to vector<8x1xf32>
    %cst_35 = arith.constant 3.200000e+01 : f32
    %96 = vector.broadcast %cst_35 : f32 to vector<8x1xf32>
    %97 = arith.divf %95, %96 : vector<8x1xf32>
    %98 = arith.mulf %93, %93 : vector<8x32xf32>
    %cst_36 = arith.constant dense<0.000000e+00> : vector<8xf32>
    %99 = vector.multi_reduction <add>, %98, %cst_36 [1] : vector<8x32xf32> to vector<8xf32>
    %100 = vector.shape_cast %99 : vector<8xf32> to vector<8x1xf32>
    %cst_37 = arith.constant 3.200000e+01 : f32
    %101 = vector.broadcast %cst_37 : f32 to vector<8x1xf32>
    %102 = arith.divf %100, %101 : vector<8x1xf32>
    %103 = arith.mulf %97, %97 : vector<8x1xf32>
    %104 = arith.subf %102, %103 : vector<8x1xf32>
    %cst_38 = arith.constant 9.99999974E-6 : f32
    %105 = vector.broadcast %cst_38 : f32 to vector<8x1xf32>
    %106 = arith.addf %104, %105 : vector<8x1xf32>
    %107 = math.rsqrt %106 : vector<8x1xf32>
    %108 = vector.broadcast %97 : vector<8x1xf32> to vector<8x32xf32>
    %109 = arith.subf %93, %108 : vector<8x32xf32>
    %110 = vector.broadcast %107 : vector<8x1xf32> to vector<8x32xf32>
    %111 = arith.mulf %109, %110 : vector<8x32xf32>
    %c0_39 = arith.constant 0 : index
    %c0_40 = arith.constant 0 : index
    %112 = vector.load %arg7[%c0_39, %c0_40] : memref<1x32xf32, #tpu.memory_space<vmem>>, vector<1x32xf32>
    %113 = vector.broadcast %112 : vector<1x32xf32> to vector<8x32xf32>
    %114 = arith.mulf %111, %113 : vector<8x32xf32>
    %c0_41 = arith.constant 0 : index
    %c0_42 = arith.constant 0 : index
    %115 = vector.load %arg8[%c0_41, %c0_42] : memref<1x32xf32, #tpu.memory_space<vmem>>, vector<1x32xf32>
    %116 = vector.broadcast %115 : vector<1x32xf32> to vector<8x32xf32>
    %117 = arith.addf %114, %116 : vector<8x32xf32>
    %c0_43 = arith.constant 0 : index
    %c0_44 = arith.constant 0 : index
    %118 = vector.load %arg9[%c0_43, %c0_44] : memref<32x32xf32, #tpu.memory_space<vmem>>, vector<32x32xf32>
    %cst_45 = arith.constant dense<0.000000e+00> : vector<8x32xf32>
    %119 = tpu.matmul %117, %118, %cst_45 {dimension_numbers = #tpu.dot_dimension_numbers<[1], [0], [0], [1], [0, 0, 1, 1], [], []>} : vector<8x32xf32>, vector<32x32xf32>, vector<8x32xf32> -> vector<8x32xf32>
    %c0_46 = arith.constant 0 : index
    %c0_47 = arith.constant 0 : index
    %120 = vector.load %arg10[%c0_46, %c0_47] : memref<1x32xf32, #tpu.memory_space<vmem>>, vector<1x32xf32>
    %121 = vector.broadcast %120 : vector<1x32xf32> to vector<8x32xf32>
    %122 = arith.addf %119, %121 : vector<8x32xf32>
    %cst_48 = arith.constant 5.000000e-01 : f32
    %123 = vector.broadcast %cst_48 : f32 to vector<8x32xf32>
    %124 = arith.mulf %123, %122 : vector<8x32xf32>
    %cst_49 = arith.constant 0.707106769 : f32
    %125 = vector.broadcast %cst_49 : f32 to vector<8x32xf32>
    %126 = arith.mulf %122, %125 : vector<8x32xf32>
    %127 = math.erf %126 : vector<8x32xf32>
    %cst_50 = arith.constant 1.000000e+00 : f32
    %128 = vector.broadcast %cst_50 : f32 to vector<8x32xf32>
    %129 = arith.addf %128, %127 : vector<8x32xf32>
    %130 = arith.mulf %124, %129 : vector<8x32xf32>
    %c0_51 = arith.constant 0 : index
    %c0_52 = arith.constant 0 : index
    %131 = vector.load %arg11[%c0_51, %c0_52] : memref<32x32xf32, #tpu.memory_space<vmem>>, vector<32x32xf32>
    %cst_53 = arith.constant dense<0.000000e+00> : vector<8x32xf32>
    %132 = tpu.matmul %130, %131, %cst_53 {dimension_numbers = #tpu.dot_dimension_numbers<[1], [0], [0], [1], [0, 0, 1, 1], [], []>} : vector<8x32xf32>, vector<32x32xf32>, vector<8x32xf32> -> vector<8x32xf32>
    %c0_54 = arith.constant 0 : index
    %c0_55 = arith.constant 0 : index
    %133 = vector.load %arg12[%c0_54, %c0_55] : memref<1x32xf32, #tpu.memory_space<vmem>>, vector<1x32xf32>
    %134 = vector.broadcast %133 : vector<1x32xf32> to vector<8x32xf32>
    %135 = arith.addf %132, %134 : vector<8x32xf32>
    %136 = arith.addf %117, %135 : vector<8x32xf32>
    %cst_56 = arith.constant dense<0.000000e+00> : vector<8xf32>
    %137 = vector.multi_reduction <add>, %136, %cst_56 [1] : vector<8x32xf32> to vector<8xf32>
    %138 = vector.shape_cast %137 : vector<8xf32> to vector<8x1xf32>
    %cst_57 = arith.constant 3.200000e+01 : f32
    %139 = vector.broadcast %cst_57 : f32 to vector<8x1xf32>
    %140 = arith.divf %138, %139 : vector<8x1xf32>
    %141 = arith.mulf %136, %136 : vector<8x32xf32>
    %cst_58 = arith.constant dense<0.000000e+00> : vector<8xf32>
    %142 = vector.multi_reduction <add>, %141, %cst_58 [1] : vector<8x32xf32> to vector<8xf32>
    %143 = vector.shape_cast %142 : vector<8xf32> to vector<8x1xf32>
    %cst_59 = arith.constant 3.200000e+01 : f32
    %144 = vector.broadcast %cst_59 : f32 to vector<8x1xf32>
    %145 = arith.divf %143, %144 : vector<8x1xf32>
    %146 = arith.mulf %140, %140 : vector<8x1xf32>
    %147 = arith.subf %145, %146 : vector<8x1xf32>
    %cst_60 = arith.constant 9.99999974E-6 : f32
    %148 = vector.broadcast %cst_60 : f32 to vector<8x1xf32>
    %149 = arith.addf %147, %148 : vector<8x1xf32>
    %150 = math.rsqrt %149 : vector<8x1xf32>
    %151 = vector.broadcast %140 : vector<8x1xf32> to vector<8x32xf32>
    %152 = arith.subf %136, %151 : vector<8x32xf32>
    %153 = vector.broadcast %150 : vector<8x1xf32> to vector<8x32xf32>
    %154 = arith.mulf %152, %153 : vector<8x32xf32>
    %c0_61 = arith.constant 0 : index
    %c0_62 = arith.constant 0 : index
    %155 = vector.load %arg13[%c0_61, %c0_62] : memref<1x32xf32, #tpu.memory_space<vmem>>, vector<1x32xf32>
    %156 = vector.broadcast %155 : vector<1x32xf32> to vector<8x32xf32>
    %157 = arith.mulf %154, %156 : vector<8x32xf32>
    %c0_63 = arith.constant 0 : index
    %c0_64 = arith.constant 0 : index
    %158 = vector.load %arg14[%c0_63, %c0_64] : memref<1x32xf32, #tpu.memory_space<vmem>>, vector<1x32xf32>
    %159 = vector.broadcast %158 : vector<1x32xf32> to vector<8x32xf32>
    %160 = arith.addf %157, %159 : vector<8x32xf32>
    %161 = vector.shape_cast %160 : vector<8x32xf32> to vector<1x8x32xf32>
    %c0_65 = arith.constant 0 : index
    %c0_66 = arith.constant 0 : index
    %c0_67 = arith.constant 0 : index
    %162 = vector.load %arg15[%c0_65, %c0_66, %c0_67] : memref<1x8x32xf32, #tpu.memory_space<vmem>>, vector<1x8x32xf32>
    tpu.vector_store %arg15[%c0_65, %c0_66, %c0_67], %161 {strides = array<i32>} : memref<1x8x32xf32, #tpu.memory_space<vmem>>, vector<1x8x32xf32>,
    return
  }
  func.func @transform_0(%arg0: i32) -> (i32, i32, i32) {
    %c0_i32 = arith.constant 0 : i32
    %c0_i32_0 = arith.constant 0 : i32
    %c0_i32_1 = arith.constant 0 : i32
    return %arg0, %c0_i32, %c0_i32_0 : i32, i32, i32
  }
  func.func @transform_1(%arg0: i32) -> (i32, i32, i32) {
    %c0_i32 = arith.constant 0 : i32
    %c0_i32_0 = arith.constant 0 : i32
    %c0_i32_1 = arith.constant 0 : i32
    return %arg0, %c0_i32, %c0_i32_0 : i32, i32, i32
  }
  func.func @transform_2(%arg0: i32) -> (i32, i32) {
    %c0_i32 = arith.constant 0 : i32
    %c0_i32_0 = arith.constant 0 : i32
    %c0_i32_1 = arith.constant 0 : i32
    return %c0_i32, %c0_i32_0 : i32, i32
  }
  func.func @transform_3(%arg0: i32) -> (i32, i32) {
    %c0_i32 = arith.constant 0 : i32
    %c0_i32_0 = arith.constant 0 : i32
    %c0_i32_1 = arith.constant 0 : i32
    return %c0_i32, %c0_i32_0 : i32, i32
  }
  func.func @transform_4(%arg0: i32) -> (i32, i32, i32) {
    %c0_i32 = arith.constant 0 : i32
    %c0_i32_0 = arith.constant 0 : i32
    %c0_i32_1 = arith.constant 0 : i32
    %c0_i32_2 = arith.constant 0 : i32
    return %c0_i32, %c0_i32_0, %c0_i32_1 : i32, i32, i32
  }
  func.func @transform_5(%arg0: i32) -> (i32, i32) {
    %c0_i32 = arith.constant 0 : i32
    %c0_i32_0 = arith.constant 0 : i32
    %c0_i32_1 = arith.constant 0 : i32
    return %c0_i32, %c0_i32_0 : i32, i32
  }
  func.func @transform_6(%arg0: i32) -> (i32, i32) {
    %c0_i32 = arith.constant 0 : i32
    %c0_i32_0 = arith.constant 0 : i32
    %c0_i32_1 = arith.constant 0 : i32
    return %c0_i32, %c0_i32_0 : i32, i32
  }
  func.func @transform_7(%arg0: i32) -> (i32, i32) {
    %c0_i32 = arith.constant 0 : i32
    %c0_i32_0 = arith.constant 0 : i32
    %c0_i32_1 = arith.constant 0 : i32
    return %c0_i32, %c0_i32_0 : i32, i32
  }
  func.func @transform_8(%arg0: i32) -> (i32, i32) {
    %c0_i32 = arith.constant 0 : i32
    %c0_i32_0 = arith.constant 0 : i32
    %c0_i32_1 = arith.constant 0 : i32
    return %c0_i32, %c0_i32_0 : i32, i32
  }
  func.func @transform_9(%arg0: i32) -> (i32, i32) {
    %c0_i32 = arith.constant 0 : i32
    %c0_i32_0 = arith.constant 0 : i32
    %c0_i32_1 = arith.constant 0 : i32
    return %c0_i32, %c0_i32_0 : i32, i32
  }
  func.func @transform_10(%arg0: i32) -> (i32, i32) {
    %c0_i32 = arith.constant 0 : i32
    %c0_i32_0 = arith.constant 0 : i32
    %c0_i32_1 = arith.constant 0 : i32
    return %c0_i32, %c0_i32_0 : i32, i32
  }
  func.func @transform_11(%arg0: i32) -> (i32, i32) {
    %c0_i32 = arith.constant 0 : i32
    %c0_i32_0 = arith.constant 0 : i32
    %c0_i32_1 = arith.constant 0 : i32
    return %c0_i32, %c0_i32_0 : i32, i32
  }
  func.func @transform_12(%arg0: i32) -> (i32, i32) {
    %c0_i32 = arith.constant 0 : i32
    %c0_i32_0 = arith.constant 0 : i32
    %c0_i32_1 = arith.constant 0 : i32
    return %c0_i32, %c0_i32_0 : i32, i32
  }
  func.func @transform_13(%arg0: i32) -> (i32, i32) {
    %c0_i32 = arith.constant 0 : i32
    %c0_i32_0 = arith.constant 0 : i32
    %c0_i32_1 = arith.constant 0 : i32
    return %c0_i32, %c0_i32_0 : i32, i32
  }
  func.func @transform_14(%arg0: i32) -> (i32, i32, i32) {
    %c0_i32 = arith.constant 0 : i32
    %c0_i32_0 = arith.constant 0 : i32
    %c0_i32_1 = arith.constant 0 : i32
    return %arg0, %c0_i32, %c0_i32_0 : i32, i32, i32
  }
  func.func @transform_15(%arg0: i32) -> (i32, i32, i32, i32) {
    %c0_i32 = arith.constant 0 : i32
    %c0_i32_0 = arith.constant 0 : i32
    %c0_i32_1 = arith.constant 0 : i32
    %c0_i32_2 = arith.constant 0 : i32
    return %arg0, %c0_i32, %c0_i32_0, %c0_i32_1 : i32, i32, i32, i32
  }
}

</mosaic_0001>

<bundles_post_ra>
// kernel: tpu_custom_call.1
= control target key start
LH: loop header
LB: loop body
LE: loop exit
PB: predicated region body
PF: predicated region fallthrough
CT: control target
= control target key end

     0   :  { %s3278_s0 = inlined_call_operand.hbm [shape: f32[2,8,32], index: 0, kind: input, shape index: {}]   ;;  %s3279_s1 = inlined_call_operand.hbm [shape: f32[2,8,8], index: 1, kind: input, shape index: {}]   ;;  %s3280_s2 = inlined_call_operand.hbm [shape: f32[32,96], index: 2, kind: input, shape index: {}]   ;;  %s3281_s3 = inlined_call_operand.vmem [shape: f32[1,96], index: 3, kind: input, shape index: {}]   ;;  %s3282_s4 = inlined_call_operand.hbm [shape: f32[4,8,32], index: 4, kind: input, shape index: {}]   ;;  %s3283_s5 = inlined_call_operand.vmem [shape: f32[1,32], index: 5, kind: input, shape index: {}]   ;;  %s3284_s6 = inlined_call_operand.vmem [shape: f32[1,32], index: 6, kind: input, shape index: {}]   ;;  %s3285_s7 = inlined_call_operand.vmem [shape: f32[1,32], index: 7, kind: input, shape index: {}]   ;;  %s3286_s8 = inlined_call_operand.hbm [shape: f32[32,32], index: 8, kind: input, shape index: {}]   ;;  %s3287_s9 = inlined_call_operand.vmem [shape: f32[1,32], index: 9, kind: input, shape index: {}]   ;;  %s3288_s10 = inlined_call_operand.vmem [shape: f32[32,32], index: 10, kind: input, shape index: {}]   ;;  %s3289_s11 = inlined_call_operand.vmem [shape: f32[1,32], index: 11, kind: input, shape index: {}]   ;;  %s3290_s12 = inlined_call_operand.vmem [shape: f32[1,32], index: 12, kind: input, shape index: {}]   ;;  %s3291_s13 = inlined_call_operand.vmem [shape: f32[1,32], index: 13, kind: input, shape index: {}]   ;;  %s3292_s14 = inlined_call_operand.hbm [shape: f32[2,8,32], index: 14, kind: output, shape index: {0}]   ;;  %s3293_s15 = inlined_call_operand.hbm [shape: f32[2,4,8,8], index: 15, kind: output, shape index: {1}]  }
   0x1   :  { %3303 = sst [smem:[#allocation22_spill]] %s3280_s2 }
   0x2   :  { %3304 = sst [smem:[#allocation23_spill]] %s3282_s4 }
   0x3   :  { %3305 = sst [smem:[#allocation24_spill]] %s3286_s8 }
   0x4   :  { %3306 = sst [smem:[#allocation25_spill]] %s3287_s9 }
   0x5   :  { %3307 = sst [smem:[#allocation26_spill]] %s3288_s10 }
   0x6   :  { %3308 = sst [smem:[#allocation27_spill]] %s3289_s11 }
   0x7   :  { %3309 = sst [smem:[#allocation28_spill]] %s3290_s12 }
   0x8   :  { %3310 = sst [smem:[#allocation29_spill]] %s3291_s13 }
   0x9   :  { %3311 = sst [smem:[#allocation30_spill]] %s3292_s14 }
   0xa   :  { %3312 = sst [smem:[#allocation31_spill]] %s3293_s15 }
   0xb   :  { %21 = vsyncpa [#allocation3], 0 }
   0xc   :  { %23 = vsyncpa [#allocation3 + $0x1], 0 }
   0xd   :  { %24 = vsyncpa [#allocation6], 0 }
   0xe   :  { %26 = vsyncpa [#allocation6 + $0x1], 0 }
   0xf   :  { %27 = vsyncpa [#allocation9], 0 }
  0x10   :  { %28 = vsyncpa [#allocation4], 0 }
  0x11   :  { %30 = vsyncpa [#allocation4 + $0x1], 0 }
  0x12   :  { %31 = vsyncpa [#allocation13], 0 }
  0x13   :  { %33 = vsyncpa [#allocation13 + $0x1], 0  ;;  %s2787_s18 = smov 0   ;;  %s2789_s19 = smov 0  }
  0x14   :  { %s2791_s20 = smov 0   ;;  %s2793_s21 = smov 0  }
  0x15 LB: > { %3313 = sst [smem:[#allocation20_spill]] %s2674_s18  ;;  %s2808_s22 = sadd.s32 4294967295, %s2686_s21   ;;  %s2686_s21 = sphi %s2793_s21, %s3347_s21   ;;  %s2682_s20 = sphi %s2791_s20, %s3346_s20   ;;  %s2678_s19 = sphi %s2789_s19, %s3345_s19   ;;  %s2674_s18 = sphi %s2787_s18, %s3344_s18  }
  0x16   : > { %s2108_s23 = sadd.s32 4294967294, %s2686_s21   ;;  %p59_p0 = scmp.ne.s32.totalorder %s2678_s19, %s2674_s18 }
  0x17   : > { %p3297_p1 = scmp.eq.s32.totalorder %s2808_s22, 0  ;;  %p367_p3 = scmp.eq.s32.totalorder %s2108_s23, 1 }
  0x18   : > { %p2109_p5 = scmp.ge.s32.totalorder %s2686_s21, 1  ;;  %p400_p7 = scmp.lt.s32.totalorder %s2686_s21, 3 }
  0x19   : > { %p2817_p4 = por %p3297_p1, %p59_p0  ;;  %p2822_p6 = por %p367_p3, %p59_p0 }
  0x1a   : > { %p2827_p8 = pnand %p2109_p5, %p400_p7  ;;  %s2688_s27 = smov [#allocation7]  }
  0x1b   : > { %s3314_s24 = scalar_select %p2817_p4, 1, 0 }
  0x1c   : > { %s3315_s25 = scalar_select %p2822_p6, 1, 0 }
  0x1d   : > { %s3317_s26 = scalar_select %p2827_p8, 1, 0 }
  0x1e   : > { %3316 = sst [smem:[#allocation21_spill]] %s3315_s25  ;;  %s412_s28 = sshll.u32 %s2688_s27, 4  ;;  %s2831_s28 = int_to_ptr.vmem [resolvable:$true] %s412_s28 }
  0x1f   : > { %p2331_p9 = pneg %p2827_p8  ;;  %s2689_s30 = smov [#allocation8]  }
  0x20   : > { %s428_s16 = sshll.u32 %s2689_s30, 4  ;;  %s2690_s17 = smov [#allocation10]   ;;  %s2842_s16 = int_to_ptr.vmem [resolvable:$true] %s428_s16 }
  0x21   : > { %p2838_p11 = pnand %p2331_p9, %p3297_p1  ;;  %s2844_s23 = sshll.u32 %s2690_s17, 4  ;;  %s451_s23 = int_to_ptr.vmem [resolvable:$true] %s2844_s23 }
  0x22   : > { %s3319_s2 = sld [smem:[#allocation22_spill]] }
  0x23   : > { %p2854_p13 = pneg %p2838_p11 }
  0x28   : > { %s2432_s18 = scalar_lea.hbm %s3319_s2, 512 }
  0x29   : > { %p2433_p12 = scmp.ne.s32.totalorder %s3319_s2, %s2432_s18  ;;  %p2439_p5 = scmp.lt.u32.totalorder %s2432_s18, %s3319_s2 }
  0x2b   : > { %p2435_p0 = pnand %p2854_p13, %p2433_p12 }
  0x2d   : > { %p2436_p3 = pneg %p2435_p0 }
  0x2f   : > { %p2441_p7 = pnand %p2439_p5, %p2436_p3 }
  0x31   : > { %2444 = shalt.err (!%p2441_p7)
}
  0x32   : > { %s2445_s13 = scalar_lea.vmem %s2831_s28, 512  ;;  %p2453_p2 = scmp.lt.s32.totalorder %s2831_s28, %s2831_s28 }
  0x33   : > { %p2446_p9 = scmp.ne.s32.totalorder %s2831_s28, %s2445_s13  ;;  %p2454_p6 = scmp.lt.s32.totalorder %s2445_s13, %s2445_s13 }
  0x35   : > { %p2448_p10 = pnand %p2446_p9, %p2854_p13  ;;  %p2455_p12 = por %p2454_p6, %p2453_p2 }
  0x37   : > { %p2449_p1 = pneg %p2448_p10 }
  0x39   : > { %p2456_p0 = pnand %p2455_p12, %p2449_p1 }
  0x3b   : > { %2459 = shalt.err (!%p2456_p0)
}
  0x3c   : > { %s2691_s14 = smov 128   ;;  %s2692_s18 = smov 8  }
  0x3d   : > { %2334 = dma.hbm_to_vmem [thread:$0]  (!%p2838_p11), %s3319_s2, 512, %s2831_s28, [#allocation6], %s2691_s14, %s2691_s14, %s2692_s18  }
  0x3e   : > { %s3321_s4 = sld [smem:[#allocation23_spill]] }
  0x44   : > { %s2460_s13 = scalar_lea.hbm %s3321_s4, 512 }
  0x45   : > { %p2461_p1 = scmp.ne.s32.totalorder %s3321_s4, %s2460_s13  ;;  %p2467_p10 = scmp.lt.u32.totalorder %s2460_s13, %s3321_s4 }
  0x47   : > { %p2463_p2 = pnand %p2461_p1, %p2854_p13 }
  0x49   : > { %p2464_p6 = pneg %p2463_p2 }
  0x4b   : > { %p2469_p3 = pnand %p2467_p10, %p2464_p6 }
  0x4d   : > { %2472 = shalt.err (!%p2469_p3)
}
  0x4e   : > { %s2473_s28 = scalar_lea.vmem %s2842_s16, 512  ;;  %p2481_p12 = scmp.lt.s32.totalorder %s2842_s16, %s2842_s16 }
  0x4f   : > { %p2474_p5 = scmp.ne.s32.totalorder %s2842_s16, %s2473_s28  ;;  %p2482_p0 = scmp.lt.s32.totalorder %s2473_s28, %s2473_s28 }
  0x51   : > { %p2476_p7 = pnand %p2474_p5, %p2854_p13  ;;  %p2483_p1 = por %p2482_p0, %p2481_p12 }
  0x53   : > { %p2477_p9 = pneg %p2476_p7 }
  0x55   : > { %p2484_p2 = pnand %p2483_p1, %p2477_p9 }
  0x57   : > { %2487 = shalt.err (!%p2484_p2)
}
  0x58   : > { %2337 = dma.hbm_to_vmem [thread:$0]  (!%p2838_p11), %s3321_s4, 512, %s2842_s16, [#allocation9], %s2691_s14, %s2691_s14, %s2692_s18  }
  0x59   : > { %s3322_s8 = sld [smem:[#allocation24_spill]] }
  0x5f   : > { %s2488_s25 = scalar_lea.hbm %s3322_s8, 512 }
  0x60   : > { %p2489_p6 = scmp.ne.s32.totalorder %s3322_s8, %s2488_s25  ;;  %p2495_p5 = scmp.lt.u32.totalorder %s2488_s25, %s3322_s8 }
  0x62   : > { %p2491_p10 = pnand %p2489_p6, %p2854_p13 }
  0x64   : > { %p2492_p3 = pneg %p2491_p10 }
  0x66   : > { %p2497_p7 = pnand %p2495_p5, %p2492_p3 }
  0x68   : > { %2500 = shalt.err (!%p2497_p7)
}
  0x69   : > { %s2501_s28 = scalar_lea.vmem %s451_s23, 512  ;;  %p2509_p1 = scmp.lt.s32.totalorder %s451_s23, %s451_s23 }
  0x6a   : > { %p2502_p9 = scmp.ne.s32.totalorder %s451_s23, %s2501_s28  ;;  %p2510_p2 = scmp.lt.s32.totalorder %s2501_s28, %s2501_s28 }
  0x6c   : > { %p2504_p12 = pnand %p2502_p9, %p2854_p13  ;;  %p2511_p4 = por %p2510_p2, %p2509_p1 }
  0x6e   : > { %p2505_p0 = pneg %p2504_p12 }
  0x70   : > { %p2512_p8 = pnand %p2511_p4, %p2505_p0 }
  0x72   : > { %2515 = shalt.err (!%p2512_p8)
}
  0x73   : > { %2340 = dma.hbm_to_vmem [thread:$0]  (!%p2838_p11), %s3322_s8, 512, %s451_s23, [#allocation9], %s2691_s14, %s2691_s14, %s2692_s18  }
  0x74   : > { %s2927_s12 = sadd.s32 1, %s2686_s21   ;;  %s46_s10 = sadd.s32 1, %s2682_s20 }
  0x75   : > { %s43_s29 = ssub.s32 %s2686_s21, %s2927_s12  ;;  %p53_p8 = scmp.ne.s32.totalorder %s2682_s20, %s2678_s19 }
  0x76   : > { %p44_p4 = scmp.eq.s32.totalorder %s43_s29, 0  ;;  %p54_p13 = scmp.eq.s32.totalorder %s2686_s21, 0 }
  0x77   : > { %p2358_p6 = scmp.lt.s32.totalorder %s2686_s21, 2  ;;  %p3323_p3 = scmp.eq.s32.totalorder %s2808_s22, 1 }
  0x78   : > { %s2937_s11 = scalar_select %p44_p4, %s2682_s20, %s46_s10  }
  0x79   : > { %p55_p10 = por %p54_p13, %p53_p8  ;;  %p2941_p5 = por %p3323_p3, %p53_p8 }
  0x7a   : > { %s479_s25 = sand.u32 1, %s2682_s20   ;;  %s2115_s27 = sshll.u32 %s2686_s21, 7 }
  0x7b   : > { %s3324_s15 = scalar_select %p2941_p5, 1, 0 }
  0x7c   : > { %s2947_s23 = sshll.u32 %s479_s25, 3  ;;  %s2952_s30 = scalar_lea.hbm %s3278_s0, %s2115_s27 }
  0x7d   : > { %s483_s17 = scalar_lea.vmem [#allocation2], %s2947_s23  ;;  %p2955_p11 = pnand %p2358_p6, %p55_p10 }
  0x7e   : > { %s490_s13 = sshll.u32 %s483_s17, 4  ;;  %s2964_s29 = scalar_lea.hbm %s3279_s1, %s2115_s27  ;;  %s2959_s13 = int_to_ptr.vmem [resolvable:$true] %s490_s13 }
  0x7f   : > { %s480_s10 = scalar_lea.sflag [#allocation3], %s479_s25  ;;  %s2516_s14 = scalar_lea.hbm %s2952_s30, 128 }
  0x80   : > { %p2517_p7 = scmp.ne.s32.totalorder %s2952_s30, %s2516_s14  ;;  %p2518_p9 = pneg %p2955_p11 }
  0x81   : > { %s2521_s2 = scalar_lea.hbm %s3278_s0, 256  ;;  %p2522_p1 = scmp.lt.u32.totalorder %s2952_s30, %s3278_s0 }
  0x82   : > { %p2519_p12 = pnand %p2518_p9, %p2517_p7  ;;  %p2523_p2 = scmp.lt.u32.totalorder %s2521_s2, %s2516_s14 }
  0x83   : > { %p2525_p8 = scmp.lt.u32.totalorder %s2516_s14, %s2952_s30 }
  0x84   : > { %p2520_p0 = pneg %p2519_p12  ;;  %p2524_p4 = por %p2523_p2, %p2522_p1 }
  0x86   : > { %p2526_p13 = por %p2525_p8, %p2524_p4 }
  0x88   : > { %p2527_p6 = pnand %p2526_p13, %p2520_p0 }
  0x8a   : > { %2530 = shalt.err (!%p2527_p6)
}
  0x8b   : > { %s2531_s25 = scalar_lea.vmem %s2959_s13, 128  ;;  %s2693_s27 = smov [#allocation2]  }
  0x8c   : > { %p2532_p10 = scmp.ne.s32.totalorder %s2959_s13, %s2531_s25  ;;  %s2536_s16 = sshll.u32 %s2693_s27, 4  ;;  %s2537_s16 = int_to_ptr.vmem [resolvable:$false] %s2536_s16 }
  0x8d   : > { %s2538_s4 = scalar_lea.vmem %s2537_s16, 256  ;;  %p2539_p12 = scmp.lt.s32.totalorder %s2959_s13, %s2537_s16 }
  0x8e   : > { %p2534_p3 = pnand %p2532_p10, %p2518_p9  ;;  %p2540_p1 = scmp.lt.s32.totalorder %s2538_s4, %s2531_s25 }
  0x90   : > { %p2535_p7 = pneg %p2534_p3  ;;  %p2541_p2 = por %p2540_p1, %p2539_p12 }
  0x92   : > { %p2542_p4 = pnand %p2541_p2, %p2535_p7 }
  0x94   : > { %2545 = shalt.err (!%p2542_p4)
}
  0x95   : > { %2344 = dma.hbm_to_vmem [thread:$0]  (!%p2955_p11), %s2952_s30, 128, %s2959_s13, %s480_s10  }
  0x96   : > { %s497_s2 = sand.u32 1, %s2686_s21   ;;  %s501_s8 = scalar_lea.vmem [#allocation5], %s2947_s23 }
  0x97   : > { %s508_s9 = sshll.u32 %s501_s8, 4  ;;  %s498_s14 = scalar_lea.sflag [#allocation6], %s497_s2  ;;  %s509_s9 = int_to_ptr.vmem [resolvable:$true] %s508_s9 }
  0x98   : > { %s2546_s18 = scalar_lea.hbm %s2964_s29, 128  ;;  %s2551_s27 = scalar_lea.hbm %s3279_s1, 256 }
  0x99   : > { %p2547_p0 = scmp.ne.s32.totalorder %s2964_s29, %s2546_s18  ;;  %p2552_p6 = scmp.lt.u32.totalorder %s2964_s29, %s3279_s1 }
  0x9a   : > { %p2553_p10 = scmp.lt.u32.totalorder %s2551_s27, %s2546_s18  ;;  %p2555_p7 = scmp.lt.u32.totalorder %s2546_s18, %s2964_s29 }
  0x9b   : > { %p2549_p8 = pnand %p2547_p0, %p2518_p9 }
  0x9c   : > { %p2554_p3 = por %p2553_p10, %p2552_p6 }
  0x9d   : > { %p2550_p13 = pneg %p2549_p8 }
  0x9e   : > { %p2556_p12 = por %p2555_p7, %p2554_p3 }
  0xa0   : > { %p2557_p1 = pnand %p2556_p12, %p2550_p13 }
  0xa2   : > { %2560 = shalt.err (!%p2557_p1)
}
  0xa3   : > { %s2561_s23 = scalar_lea.vmem %s509_s9, 128  ;;  %s2694_s30 = smov [#allocation5]  }
  0xa4   : > { %p2562_p2 = scmp.ne.s32.totalorder %s509_s9, %s2561_s23  ;;  %s2566_s13 = sshll.u32 %s2694_s30, 4  ;;  %s2567_s13 = int_to_ptr.vmem [resolvable:$false] %s2566_s13 }
  0xa5   : > { %s2568_s10 = scalar_lea.vmem %s2567_s13, 256  ;;  %p2569_p8 = scmp.lt.s32.totalorder %s509_s9, %s2567_s13 }
  0xa6   : > { %p2564_p4 = pnand %p2562_p2, %p2518_p9  ;;  %p2570_p5 = scmp.lt.s32.totalorder %s2568_s10, %s2561_s23 }
  0xa8   : > { %p2565_p0 = pneg %p2564_p4  ;;  %p2571_p6 = por %p2570_p5, %p2569_p8 }
  0xaa   : > { %p2572_p10 = pnand %p2571_p6, %p2565_p0 }
  0xac   : > { %2575 = shalt.err (!%p2572_p10)
}
  0xad   : > { %2347 = dma.hbm_to_vmem [thread:$0]  (!%p2955_p11), %s2964_s29, 128, %s509_s9, %s498_s14  }
  0xae   : > { %p3326_p13 = scmp.ne.s32.totalorder %s3317_s26, 0 }
  0xaf   : > { %s3015_s2 = sand.u32 (!%p3326_p13), 1, %s2678_s19   ;;  %p3327_p5 = scmp.ne.s32.totalorder (!%p3326_p13), %s3314_s24, 0 }
  0xb0   : > { %517 = sbr.rel (%p3326_p13) target bundleno = 2467 (0x9a3), region = 76  ;;  %s3018_s8 = sshll.u32 (!%p3326_p13), %s3015_s2, 3 }
  0xb1   : > { %s520_s18 = scalar_lea.sflag (!%p3326_p13), [#allocation3], %s3015_s2  ;;  %s523_s17 = scalar_lea.vmem (!%p3326_p13), [#allocation2], %s3018_s8 }
  0xb7   : > { %2649 = dma.done.wait (%p3327_p5), %s520_s18, 128  }
  0xb8   : > { %2651 = vsyncadd (%p3327_p5), %s520_s18, 4294967168  ;;  %s528_s26 = sand.u32 1, %s2808_s22   ;;  %s532_s29 = scalar_lea.vmem [#allocation5], %s3018_s8 }
  0xb9   : > { %s529_s28 = scalar_lea.sflag [#allocation6], %s528_s26 }
  0xba   : > { %2653 = dma.done.wait (%p3327_p5), %s529_s28, 128  }
  0xbb   : > { %2655 = vsyncadd (%p3327_p5), %s529_s28, 4294967168  ;;  %p3328_p11 = scmp.eq.s32.totalorder %s2808_s22, 0 }
  0xbd   : > { %2657 = dma.done.wait (%p3328_p11), [#allocation6], 512   ;;  %p3329_p9 = pmov %p3328_p11 }
  0xbf   : > { %2659 = vsyncadd (%p3329_p9), [#allocation6], 4294966784  ;;  %p3330_p3 = pmov %p3329_p9 }
  0xc1   : > { %2661 = dma.done.wait (%p3330_p3), [#allocation9], 1024   ;;  %p3331_p7 = pmov %p3330_p3 }
  0xc2   : > { %v2695_v0 = vmov 0.0|0.0   ;;  %vm2696_vm0 = vmmov 0   ;;  %v2697_v1 = vmov 0.0   ;;  %v603_v2 = vld [vmem:[#allocation7] sm:$0xff]  ;;  %v604_v3 = vld [vmem:[#allocation7 + $0x8] sm:$0xff]  ;;  %v605_v4 = vld [vmem:[#allocation7 + $0x10] sm:$0xff] }
  0xc3   : > { %2663 = vsyncadd (%p3331_p7), [#allocation9], 4294966272  ;;  %2293 = vmatprep.subr.bf16.mxu0 %v2695_v0  ;;  %2208 = vmatprep.mubr.msk.f32.mxu0 %vm2696_vm0, %v2697_v1  ;;  %v2294_v5 = vpack.c.bf16 %v604_v3, %v603_v2  ;;  %v606_v6 = vld [vmem:[#allocation7 + $0x18] sm:$0xff]  ;;  %v3047_v8 = vld [vmem:[%s523_s17] sm:$0xff]  ;;  %vm614_vm1 = vcmask 261120   ;;  %s2698_s14 = smov 104  }
  0xc4   : > { %2211 = vmatprep.subr.mxu1 %v2697_v1  ;;  %2213 = vmatprep.mubr.msk.f32.mxu1 %vm2696_vm0, %v2697_v1  ;;  %v2297_v7 = vpack.c.bf16 %v606_v6, %v605_v4  ;;  %v2126_v9 = vld [vmem:[%s3281_s3] ss:$0 sm:$0xff]  ;;  %s2699_s25 = smov 120   ;;  %s2700_s27 = smov 96   ;;  %vm697_vm2 = vcmask 64512   ;;  %v602_v21 = vld [vmem:[%s532_s29] sm:$0xff] }
  0xc5   : > { %2295 = vmatpush3.bf16.msra.mxu0 %v2294_v5  ;;  %s2701_s16 = smov 112   ;;  %s2702_s4 = smov 64  }
  0xc6   : > { %2296 = vmatprep.subr.bf16.mxu0 %v2695_v0  ;;  %s2125_s23 = sshll.u32 %s3015_s2, 5  ;;  %s3332_s9 = sld [smem:[#allocation26_spill]] }
  0xc7   : > { %s3109_s30 = scalar_lea.vmem [#allocation12], %s2125_s23  ;;  %s3333_s18 = sld [smem:[#allocation25_spill]] }
  0xc8   : > { %s3334_s28 = sld [smem:[#allocation27_spill]]  ;;  %s2160_s29 = sshll.u32 %s2808_s22, 9 }
  0xc9   : > { %2298 = vmatpush3.bf16.msra.mxu0 %v2297_v7  ;;  %s1952_s24 = sshll.u32 %s3109_s30, 4  ;;  %p3336_p1 = scmp.ne.s32.totalorder %s3324_s15, 0  ;;  %s3196_s24 = int_to_ptr.vmem [resolvable:$true] %s1952_s24 }
  0xca   : > { %2221 = vmatprep.subr.mxu0 %v2697_v1  ;;  %s2576_s23 = scalar_lea.vmem %s3196_s24, 512  ;;  %s2703_s13 = smov [#allocation12]  }
  0xcb   : > { %p2577_p12 = scmp.ne.s32.totalorder %s3196_s24, %s2576_s23  ;;  %s2580_s10 = sshll.u32 %s2703_s13, 4  ;;  %s2581_s10 = int_to_ptr.vmem [resolvable:$false] %s2580_s10 }
  0xcc   : > { %2209 = vmatmul.mubr.msk.f32.vlgmr.msra.gmra.mrb[0].mxu0 %vm614_vm1, %v3047_v8  ;;  %p2583_p0 = scmp.lt.s32.totalorder %s3196_s24, %s2581_s10 }
  0xcd   : > { %2223 = vmatprep.mubr.msk.f32.mxu0 %vm2696_vm0, %v2697_v1  ;;  %p2578_p2 = pnand %p2577_p12, %p3336_p1 }
  0xcf   : > { %p2579_p4 = pneg %p2578_p2 }
 0x19f   : > { %v684_v10 = vpop.f32.mrb[0].mxu0 }
 0x1a0   : > { %v3057_v11 = vadd.f32 %v2126_v9, %v684_v10  ;;  %v2210_v12 = vpop.f32.mrb[1].mxu0 }
 0x1a2   : > { %693 = vrot.lane.b32.xlu1 %v3057_v11, %s2698_s14  ;;  %689 = vrot.lane.b32.xlu0 %v3057_v11, %s2699_s25 }
 0x1a6   : > { %695 = vrot.lane.b32.xlu1 %v3057_v11, %s2700_s27  ;;  %691 = vrot.lane.b32.xlu0 %v3057_v11, %s2701_s16 }
 0x214   : > { %v3063_v13 = vpop.permute.xlu1 %693  ;;  %v3065_v14 = vpop.permute.xlu0 %689 }
 0x215   : > { %772 = vrot.lane.b32.xlu0 %v3065_v14, %s2700_s27 }
 0x218   : > { %v696_v15 = vpop.permute.xlu1 %695  ;;  %v3068_v16 = vpop.permute.xlu0 %691 }
 0x219   : > { %2212 = vmatpush3.xpose.msk.msra.mxu1 %vm697_vm2, %v696_v15  ;;  %924 = vrot.lane.b32.xlu0 %v3063_v13, %s2700_s27 }
 0x21a   : > { %848 = vrot.lane.b32.xlu1 %v3068_v16, %s2700_s27  ;;  %2216 = vmatprep.subr.mxu1 %v2697_v1  ;;  %s3335_s27 = sld [smem:[#allocation31_spill]] }
 0x21c   : > { %2214 = vmatmul.mubr.msk.f32.vlgmr.msra.gmra.mrb[0].mxu1 %vm697_vm2, %v3057_v11 }
 0x21d   : > { %2218 = vmatprep.mubr.msk.f32.mxu1 %vm2696_vm0, %v2697_v1 }
 0x220   : > { %s3194_s16 = scalar_lea.hbm %s3335_s27, %s2160_s29 }
 0x287   : > { %v773_v17 = vpop.permute.xlu0 %772 }
 0x288   : > { %2217 = vmatpush3.xpose.msk.msra.mxu1 %vm697_vm2, %v773_v17 }
 0x289   : > { %2226 = vmatprep.subr.mxu1 %v2697_v1 }
 0x28b   : > { %2219 = vmatmul.mubr.msk.f32.vlgmr.msra.gmra.mrb[2].mxu1 %vm697_vm2, %v3065_v14  ;;  %v925_v18 = vpop.permute.xlu0 %924 }
 0x28c   : > { %v849_v19 = vpop.permute.xlu1 %848  ;;  %2227 = vmatpush3.xpose.msk.msra.mxu1 %vm697_vm2, %v925_v18  ;;  %2228 = vmatprep.mubr.msk.f32.mxu1 %vm2696_vm0, %v2697_v1 }
 0x28d   : > { %2222 = vmatpush3.xpose.msk.msra.mxu0 %vm697_vm2, %v849_v19  ;;  %2236 = vmatprep.subr.mxu1 %v2697_v1 }
 0x28e   : > { %2231 = vmatprep.subr.mxu0 %v2697_v1 }
 0x28f   : > { %2229 = vmatmul.mubr.msk.f32.vlgmr.msra.gmra.mrb[4].mxu1 %vm697_vm2, %v3063_v13 }
 0x290   : > { %2224 = vmatmul.mubr.msk.f32.vlgmr.msra.gmra.mrb[2].mxu0 %vm697_vm2, %v3068_v16  ;;  %2238 = vmatprep.mubr.msk.f32.mxu1 %vm2696_vm0, %v2697_v1 }
 0x291   : > { %2233 = vmatprep.mubr.msk.f32.mxu0 %vm2696_vm0, %v2697_v1 }
 0x2ef   : > { %v768_v20 = vpop.f32.mrb[0].mxu1 }
 0x2f0   : > { %v1000_v22 = vmul.f32 0.35355338, %v768_v20  ;;  %v2215_v23 = vpop.f32.mrb[1].mxu1 }
 0x2f2   : > { %v1004_v24 = vmul.f32 %v1000_v22, %v602_v21 }
 0x2f4   : > { %v1008_v25 = vsel %vm697_vm2, %v1004_v24, -inf }
 0x2f5   : > { %1009 = vmax.xlane.f32.xlu1 %v1008_v25 }
 0x35e   : > { %v844_v26 = vpop.f32.mrb[2].mxu1 }
 0x35f   : > { %v1001_v27 = vmul.f32 0.35355338, %v844_v26  ;;  %v2220_v28 = vpop.f32.mrb[3].mxu1 }
 0x360   : > { %v1372_v28 = vld [vmem:[#allocation8] sm:$0xff] }
 0x361   : > { %v1005_v29 = vmul.f32 %v1001_v27, %v602_v21 }
 0x362   : > { %v996_v30 = vpop.f32.mrb[4].mxu1 }
 0x363   : > { %v920_v31 = vpop.f32.mrb[2].mxu0  ;;  %v1003_v32 = vmul.f32 0.35355338, %v996_v30  ;;  %v2230_v33 = vpop.f32.mrb[5].mxu1  ;;  %v1011_v34 = vsel %vm697_vm2, %v1005_v29, -inf  ;;  %v1598_v30 = vld [vmem:[#allocation8 + $0x18] sm:$0xff] }
 0x364   : > { %v1002_v35 = vmul.f32 0.35355338, %v920_v31  ;;  %v2225_v36 = vpop.f32.mrb[3].mxu0  ;;  %1012 = vmax.xlane.f32.xlu0 %v1011_v34  ;;  %v1522_v33 = vld [vmem:[#allocation8 + $0x10] sm:$0xff] }
 0x365   : > { %v1007_v37 = vmul.f32 %v1003_v32, %v602_v21 }
 0x366   : > { %v1006_v38 = vmul.f32 %v1002_v35, %v602_v21 }
 0x367   : > { %v1017_v39 = vsel %vm697_vm2, %v1007_v37, -inf }
 0x368   : > { %1018 = vmax.xlane.f32.xlu1 %v1017_v39  ;;  %v1014_v40 = vsel %vm697_vm2, %v1006_v38, -inf }
 0x369   : > { %1015 = vmax.xlane.f32.xlu0 %v1014_v40 }
 0x382   : > { %v1010_v41 = vpop.xlane.xlu1 %1009 }
 0x383   : > { %v1020_v42 = vsub.f32 %v1004_v24, %v1010_v41 }
 0x385   : > { %v1024_v43 = vmul.f32 1.442695, %v1020_v42 }
 0x387   : > { %2410 = vpow2.f32 %v1024_v43 }
 0x391   : > { %v2411_v44 = vpop.eup %2410 }
 0x392   : > { %v1032_v45 = vsel %vm697_vm2, %v2411_v44, 0.0 }
 0x393   : > { %1033 = vadd.xlane.f32.xlu0 %v1032_v45 }
 0x3f1   : > { %v1013_v46 = vpop.xlane.xlu0 %1012 }
 0x3f2   : > { %v1021_v47 = vsub.f32 %v1005_v29, %v1013_v46  ;;  %v1374_v29 = vld [vmem:[#allocation8 + $0x8] sm:$0xff] }
 0x3f4   : > { %v1026_v48 = vmul.f32 1.442695, %v1021_v47 }
 0x3f5   : > { %v1019_v56 = vpop.xlane.xlu1 %1018 }
 0x3f6   : > { %2412 = vpow2.f32 %v1026_v48  ;;  %v1016_v49 = vpop.xlane.xlu0 %1015  ;;  %v1023_v58 = vsub.f32 %v1007_v37, %v1019_v56  ;;  %v1714_v56 = vld [vmem:[#allocation10] sm:$0xff] }
 0x3f7   : > { %v1022_v50 = vsub.f32 %v1006_v38, %v1016_v49  ;;  %v2144_v49 = vld [vmem:[%s3283_s5] ss:$0 sm:$0xff] }
 0x3f8   : > { %v1030_v59 = vmul.f32 1.442695, %v1023_v58 }
 0x3f9   : > { %v1028_v51 = vmul.f32 1.442695, %v1022_v50 }
 0x3fb   : > { %2414 = vpow2.f32 %v1028_v51 }
 0x400   : > { %v2413_v52 = vpop.eup %2412 }
 0x401   : > { %v1035_v53 = vsel %vm697_vm2, %v2413_v52, 0.0 }
 0x402   : > { %1036 = vadd.xlane.f32.xlu1 %v1035_v53 }
 0x405   : > { %v2415_v54 = vpop.eup %2414 }
 0x406   : > { %v1038_v55 = vsel %vm697_vm2, %v2415_v54, 0.0 }
 0x407   : > { %1039 = vadd.xlane.f32.xlu0 %v1038_v55 }
 0x413   : > { %1144 = vrot.lane.b32.xlu1 %v3065_v14, %s2702_s4 }
 0x41d   : > { %1068 = vrot.lane.b32.xlu0 %v3057_v11, %s2702_s4 }
 0x420   : > { %v1034_v57 = vpop.xlane.xlu0 %1033 }
 0x421   : > { %1296 = vrot.lane.b32.xlu0 %v3063_v13, %s2702_s4  ;;  %2416 = vrcp.f32 %v1034_v57 }
 0x422   : > { %2418 = vpow2.f32 %v1030_v59  ;;  %v1716_v59 = vld [vmem:[#allocation10 + $0x10] sm:$0xff] }
 0x42b   : > { %v2417_v60 = vpop.eup %2416 }
 0x42c   : > { %v1048_v61 = vmul.f32 %v2417_v60, %v1034_v57  ;;  %v2419_v3 = vpop.eup %2418  ;;  %v1715_v57 = vld [vmem:[#allocation10 + $0x8] sm:$0xff] }
 0x42d   : > { %v1041_v4 = vsel %vm697_vm2, %v2419_v3, 0.0  ;;  %v2300_v58 = vpack.c.bf16 %v1715_v57, %v1714_v56 }
 0x42e   : > { %v1052_v62 = vsub.f32 2.0, %v1048_v61 }
 0x430   : > { %v1056_v63 = vmul.f32 %v2417_v60, %v1052_v62  ;;  %v1717_v60 = vld [vmem:[#allocation10 + $0x18] sm:$0xff] }
 0x431   : > { %v2303_v61 = vpack.c.bf16 %v1717_v60, %v1716_v59 }
 0x432   : > { %v1060_v2 = vmul.f32 %v2411_v44, %v1056_v63 }
 0x434   : > { %1064 = vst.msk [vmem:[%s3109_s30] sm:$0xff] %vm697_vm2, %v1060_v2 }
 0x437   : > { %1042 = vadd.xlane.f32.xlu1 %v1041_v4 }
 0x448   : > { %1220 = vrot.lane.b32.xlu1 %v3068_v16, %s2702_s4  ;;  %s1926_s4 = scalar_lea.sflag [#allocation13], %s3015_s2 }
 0x48f   : > { %v1037_v5 = vpop.xlane.xlu1 %1036 }
 0x490   : > { %2420 = vrcp.f32 %v1037_v5 }
 0x493   : > { %v1145_v6 = vpop.permute.xlu1 %1144 }
 0x494   : > { %v1040_v7 = vpop.xlane.xlu0 %1039  ;;  %2237 = vmatpush3.msra.mxu1 %v1145_v6 }
 0x495   : > { %2422 = vrcp.f32 %v1040_v7  ;;  %2246 = vmatprep.subr.mxu1 %v2697_v1 }
 0x498   : > { %v1069_v9 = vpop.permute.xlu0 %1068 }
 0x499   : > { %2232 = vmatpush3.msra.mxu0 %v1069_v9  ;;  %v2145_v9 = vld [vmem:[%s3284_s6] ss:$0 sm:$0xff] }
 0x49a   : > { %v2421_v10 = vpop.eup %2420  ;;  %2234 = vmatmul.mubr.msk.f32.vlgmr.msra.gmra.mrb[4].mxu0 %vm697_vm2, %v1060_v2  ;;  %2241 = vmatprep.subr.mxu0 %v2697_v1 }
 0x49b   : > { %v1049_v11 = vmul.f32 %v2421_v10, %v1037_v5  ;;  %2243 = vmatprep.mubr.msk.f32.mxu0 %vm2696_vm0, %v2697_v1 }
 0x49c   : > { %v1297_v18 = vpop.permute.xlu0 %1296 }
 0x49d   : > { %v1053_v12 = vsub.f32 2.0, %v1049_v11  ;;  %v2146_v11 = vld [vmem:[%s3285_s7] ss:$0 sm:$0xff] }
 0x49f   : > { %v2423_v13 = vpop.eup %2422  ;;  %v1057_v14 = vmul.f32 %v2421_v10, %v1053_v12 }
 0x4a0   : > { %v1050_v15 = vmul.f32 %v2423_v13, %v1040_v7 }
 0x4a1   : > { %v1061_v16 = vmul.f32 %v2413_v52, %v1057_v14  ;;  %v1803_v14 = vld [vmem:[%s3332_s9] sm:$0xff] }
 0x4a2   : > { %v1054_v17 = vsub.f32 2.0, %v1050_v15  ;;  %v1804_v15 = vld [vmem:[%s3332_s9 + $0x8] sm:$0xff] }
 0x4a3   : > { %1065 = vst.msk [vmem:[%s3109_s30 + $0x8] sm:$0xff] %vm697_vm2, %v1061_v16  ;;  %2239 = vmatmul.mubr.msk.f32.vlgmr.msra.gmra.mrb[6].mxu1 %vm697_vm2, %v1061_v16  ;;  %v2306_v16 = vpack.c.bf16 %v1804_v15, %v1803_v14 }
 0x4a4   : > { %v1058_v19 = vmul.f32 %v2423_v13, %v1054_v17  ;;  %2247 = vmatpush3.msra.mxu1 %v1297_v18  ;;  %2248 = vmatprep.mubr.msk.f32.mxu1 %vm2696_vm0, %v2697_v1  ;;  %v1805_v17 = vld [vmem:[%s3332_s9 + $0x10] sm:$0xff]  ;;  %v1806_v18 = vld [vmem:[%s3332_s9 + $0x18] sm:$0xff] }
 0x4a5   : > { %2256 = vmatprep.subr.mxu1 %v2697_v1 }
 0x4a6   : > { %v1062_v20 = vmul.f32 %v2415_v54, %v1058_v19  ;;  %v2309_v19 = vpack.c.bf16 %v1806_v18, %v1805_v17 }
 0x4a8   : > { %1066 = vst.msk [vmem:[%s3109_s30 + $0x10] sm:$0xff] %vm697_vm2, %v1062_v20 }
 0x4c4   : > { %v1043_v21 = vpop.xlane.xlu1 %1042 }
 0x4c5   : > { %2424 = vrcp.f32 %v1043_v21 }
 0x4c8   : > { %v1221_v22 = vpop.permute.xlu1 %1220 }
 0x4c9   : > { %2242 = vmatpush3.msra.mxu0 %v1221_v22 }
 0x4ca   : > { %2244 = vmatmul.mubr.msk.f32.vlgmr.msra.gmra.mrb[6].mxu0 %vm697_vm2, %v1062_v20  ;;  %2251 = vmatprep.subr.mxu0 %v2697_v1  ;;  %v2147_v20 = vld [vmem:[%s3333_s18] ss:$0 sm:$0xff] }
 0x4cb   : > { %2253 = vmatprep.mubr.msk.f32.mxu0 %vm2696_vm0, %v2697_v1  ;;  %2252 = vmatpush3.msra.mxu0 %v1374_v29 }
 0x4cc   : > { %2261 = vmatprep.subr.mxu0 %v2697_v1 }
 0x4cf   : > { %v2425_v23 = vpop.eup %2424 }
 0x4d0   : > { %v1051_v24 = vmul.f32 %v2425_v23, %v1043_v21 }
 0x4d2   : > { %v1055_v25 = vsub.f32 2.0, %v1051_v24 }
 0x4d4   : > { %v1059_v26 = vmul.f32 %v2425_v23, %v1055_v25 }
 0x4d6   : > { %v1063_v27 = vmul.f32 %v2419_v3, %v1059_v26 }
 0x4d8   : > { %1067 = vst.msk [vmem:[%s3109_s30 + $0x18] sm:$0xff] %vm697_vm2, %v1063_v27  ;;  %2249 = vmatmul.mubr.msk.f32.vlgmr.msra.gmra.mrb[8].mxu1 %vm697_vm2, %v1063_v27  ;;  %s2582_s30 = scalar_lea.vmem %s2581_s10, 1024 }
 0x4d9   : > { %2258 = vmatprep.mubr.msk.f32.mxu1 %vm2696_vm0, %v2697_v1  ;;  %2257 = vmatpush3.msra.mxu1 %v1372_v28  ;;  %v2149_v28 = vld [vmem:[%s3334_s28] ss:$0 sm:$0xff]  ;;  %p2584_p8 = scmp.lt.s32.totalorder %s2582_s30, %s2576_s23 }
 0x4da   : > { %2266 = vmatprep.subr.mxu1 %v2697_v1 }
 0x4db   : > { %p2585_p6 = por %p2584_p8, %p2583_p0 }
 0x4dd   : > { %p2586_p10 = pnand %p2585_p6, %p2579_p4 }
 0x56d   : > { %v1140_v31 = vpop.f32.mrb[4].mxu0 }
 0x56e   : > { %v2235_v32 = vpop.f32.mrb[5].mxu0  ;;  %2259 = vmatmul.mubr.msk.f32.vlgmr.msra.gmra.mrb[10].mxu1 %vm697_vm2, %v1140_v31 }
 0x56f   : > { %2267 = vmatpush3.msra.mxu1 %v1598_v30  ;;  %2268 = vmatprep.mubr.msk.f32.mxu1 %vm2696_vm0, %v2697_v1 }
 0x570   : > { %2305 = vmatprep.subr.bf16.mxu1 %v2695_v0 }
 0x576   : > { %v1216_v34 = vpop.f32.mrb[6].mxu1 }
 0x577   : > { %v2240_v35 = vpop.f32.mrb[7].mxu1  ;;  %2254 = vmatmul.mubr.msk.f32.vlgmr.msra.gmra.mrb[8].mxu0 %vm697_vm2, %v1216_v34 }
 0x578   : > { %2262 = vmatpush3.msra.mxu0 %v1522_v33  ;;  %2263 = vmatprep.mubr.msk.f32.mxu0 %vm2696_vm0, %v2697_v1 }
 0x579   : > { %2299 = vmatprep.subr.bf16.mxu0 %v2695_v0 }
 0x59d   : > { %v1292_v36 = vpop.f32.mrb[6].mxu0 }
 0x59e   : > { %v2245_v37 = vpop.f32.mrb[7].mxu0  ;;  %2264 = vmatmul.mubr.msk.f32.vlgmr.msra.gmra.mrb[10].mxu0 %vm697_vm2, %v1292_v36 }
 0x59f   : > { %2279 = vmatprep.mubr.msk.f32.mxu0 %vm2696_vm0, %v2697_v1  ;;  %2301 = vmatpush3.bf16.msra.mxu0 %v2300_v58 }
 0x5a0   : > { %2302 = vmatprep.subr.bf16.mxu0 %v2695_v0 }
 0x5a3   : > { %2304 = vmatpush3.bf16.msra.mxu0 %v2303_v61 }
 0x5ab   : > { %v1368_v38 = vpop.f32.mrb[8].mxu1 }
 0x5ac   : > { %v2250_v39 = vpop.f32.mrb[9].mxu1  ;;  %2269 = vmatmul.mubr.msk.f32.vlgmr.msra.gmra.mrb[12].mxu1 %vm697_vm2, %v1368_v38 }
 0x5ad   : > { %2290 = vmatprep.mubr.msk.f32.mxu1 %vm2696_vm0, %v2697_v1  ;;  %2307 = vmatpush3.bf16.msra.mxu1 %v2306_v16 }
 0x5ae   : > { %2308 = vmatprep.subr.bf16.mxu1 %v2695_v0 }
 0x5b1   : > { %2310 = vmatpush3.bf16.msra.mxu1 %v2309_v19 }
 0x641   : > { %v1517_v40 = vpop.f32.mrb[10].mxu1 }
 0x642   : > { %v2260_v41 = vpop.f32.mrb[11].mxu1 }
 0x64a   : > { %v1444_v42 = vpop.f32.mrb[8].mxu0 }
 0x64b   : > { %v1518_v43 = vadd.f32 %v1517_v40, %v1444_v42  ;;  %v2255_v44 = vpop.f32.mrb[9].mxu0 }
 0x671   : > { %v1592_v45 = vpop.f32.mrb[10].mxu0 }
 0x672   : > { %v1596_v46 = vadd.f32 %v1592_v45, %v1518_v43  ;;  %v2265_v47 = vpop.f32.mrb[11].mxu0 }
 0x67f   : > { %v1668_v48 = vpop.f32.mrb[12].mxu1 }
 0x680   : > { %v1672_v50 = vadd.f32 %v1668_v48, %v1596_v46  ;;  %v2270_v51 = vpop.f32.mrb[13].mxu1 }
 0x682   : > { %v1680_v52 = vadd.f32 %v2144_v49, %v1672_v50 }
 0x684   : > { %v1681_v53 = vadd.f32 %v1680_v52, %v3047_v8 }
 0x686   : > { %v1682_v1 = vsel %vm614_vm1, %v1681_v53, 0.0  ;;  %v1687_v54 = vmul.f32 %v1681_v53, %v1681_v53 }
 0x687   : > { %1683 = vadd.xlane.f32.xlu1 %v1682_v1 }
 0x688   : > { %v1688_v55 = vsel %vm614_vm1, %v1687_v54, 0.0 }
 0x689   : > { %1689 = vadd.xlane.f32.xlu0 %v1688_v55 }
 0x714   : > { %v1684_v62 = vpop.xlane.xlu1 %1683 }
 0x715   : > { %v1686_v63 = vmul.f32 0.03125, %v1684_v62 }
 0x716   : > { %v1690_v8 = vpop.xlane.xlu0 %1689 }
 0x717   : > { %v1692_v2 = vmul.f32 %v1686_v63, %v1686_v63  ;;  %v1691_v3 = vmul.f32 0.03125, %v1690_v8  ;;  %v1696_v6 = vsub.f32 %v1681_v53, %v1686_v63 }
 0x719   : > { %v1693_v4 = vsub.f32 %v1691_v3, %v1692_v2 }
 0x71b   : > { %v1694_v5 = vadd.f32 1e-05, %v1693_v4 }
 0x71d   : > { %2426 = vrsqrt.f32 %v1694_v5 }
 0x727   : > { %v2427_v7 = vpop.eup %2426 }
 0x728   : > { %v1697_v10 = vmul.f32 %v2427_v7, %v1696_v6 }
 0x72a   : > { %v1705_v12 = vmul.f32 %v2145_v9, %v1697_v10 }
 0x72c   : > { %v1713_v13 = vadd.f32 %v2146_v11, %v1705_v12 }
 0x72e   : > { %2280 = vmatmul.mubr.msk.f32.vlgmr.msra.gmra.mrb[12].mxu0 %vm614_vm1, %v1713_v13 }
 0x801   : > { %v1794_v21 = vpop.f32.mrb[12].mxu0 }
 0x802   : > { %v1795_v22 = vadd.f32 %v2147_v20, %v1794_v21  ;;  %v2281_v23 = vpop.f32.mrb[13].mxu0 }
 0x804   : > { %v1799_v24 = vmul.f32 0.70710677, %v1795_v22  ;;  %v1798_v25 = vmul.f32 0.5, %v1795_v22 }
 0x806   : > { %2428 = verf.f32 %v1799_v24 }
 0x810   : > { %v2429_v0 = vpop.eup %2428 }
 0x811   : > { %v1801_v26 = vadd.f32 1.0, %v2429_v0 }
 0x813   : > { %v1802_v27 = vmul.f32 %v1801_v26, %v1798_v25 }
 0x815   : > { %2291 = vmatmul.mubr.msk.f32.vlgmr.msra.gmra.mrb[14].mxu1 %vm614_vm1, %v1802_v27 }
 0x8e8   : > { %v1883_v29 = vpop.f32.mrb[14].mxu1 }
 0x8e9   : > { %v1884_v30 = vadd.f32 %v2149_v28, %v1883_v29  ;;  %v2292_v31 = vpop.f32.mrb[15].mxu1 }
 0x8eb   : > { %v1887_v32 = vadd.f32 %v1884_v30, %v1713_v13 }
 0x8ed   : > { %v1888_v33 = vsel %vm614_vm1, %v1887_v32, 0.0  ;;  %v1892_v34 = vmul.f32 %v1887_v32, %v1887_v32 }
 0x8ee   : > { %1889 = vadd.xlane.f32.xlu0 %v1888_v33 }
 0x8ef   : > { %v1893_v35 = vsel %vm614_vm1, %v1892_v34, 0.0 }
 0x8f0   : > { %1894 = vadd.xlane.f32.xlu1 %v1893_v35 }
 0x8f1   : > { %2589 = shalt.err (!%p2586_p10)
}
 0x8f2   : > { %s2590_s18 = scalar_lea.hbm %s3194_s16, 512  ;;  %s2594_s28 = scalar_lea.hbm %s3335_s27, 1024 }
 0x8f3   : > { %p2591_p13 = scmp.ne.s32.totalorder %s3194_s16, %s2590_s18  ;;  %p2595_p9 = scmp.lt.u32.totalorder %s3194_s16, %s3335_s27 }
 0x8f4   : > { %p2596_p3 = scmp.lt.u32.totalorder %s2594_s28, %s2590_s18  ;;  %p2598_p12 = scmp.lt.u32.totalorder %s2590_s18, %s3194_s16 }
 0x8f5   : > { %p2592_p5 = pnand %p2591_p13, %p3336_p1 }
 0x8f6   : > { %p2597_p7 = por %p2596_p3, %p2595_p9 }
 0x8f7   : > { %p2593_p11 = pneg %p2592_p5 }
 0x8f8   : > { %p2599_p2 = por %p2598_p12, %p2597_p7 }
 0x8fa   : > { %p2600_p4 = pnand %p2599_p2, %p2593_p11 }
 0x8fc   : > { %2603 = shalt.err (!%p2600_p4)
}
 0x8fd   : > { %s2704_s25 = smov 128   ;;  %s2705_s23 = smov 8  }
 0x8fe   : > { %2328 = dma.vmem_to_hbm [thread:$0]  (%p3336_p1), %s3196_s24, 512, %s3194_s16, %s1926_s4, %s2704_s25, %s2704_s25, %s2705_s23  }
 0x8ff   : > { %s3337_s30 = sld [smem:[#allocation28_spill]]  ;;  %s3338_s24 = sld [smem:[#allocation29_spill]] }
 0x900   : > { %s2155_s16 = sshll.u32 %s2808_s22, 7  ;;  %s593_s4 = scalar_lea.vmem [#allocation11], %s3018_s8 }
 0x901   : > { %s1939_s26 = sshll.u32 %s593_s4, 4  ;;  %s3339_s14 = sld [smem:[#allocation30_spill]]  ;;  %s3235_s26 = int_to_ptr.vmem [resolvable:$true] %s1939_s26 }
 0x902   : > { %s1921_s23 = scalar_lea.sflag [#allocation4], %s3015_s2  ;;  %s2604_s13 = scalar_lea.vmem %s3235_s26, 128 }
 0x903   : > { %p2605_p0 = scmp.ne.s32.totalorder %s3235_s26, %s2604_s13  ;;  %s2706_s22 = smov [#allocation11]  }
 0x904   : > { %s2608_s8 = sshll.u32 %s2706_s22, 4  ;;  %s2609_s8 = int_to_ptr.vmem [resolvable:$false] %s2608_s8 }
 0x905   : > { %v2151_v45 = vld [vmem:[%s3337_s30] ss:$0 sm:$0xff]  ;;  %p2606_p8 = pnand %p2605_p0, %p3336_p1  ;;  %s2610_s10 = scalar_lea.vmem %s2609_s8, 256 }
 0x906   : > { %v2152_v47 = vld [vmem:[%s3338_s24] ss:$0 sm:$0xff]  ;;  %p2611_p10 = scmp.lt.s32.totalorder %s3235_s26, %s2609_s8  ;;  %p2612_p13 = scmp.lt.s32.totalorder %s2610_s10, %s2604_s13 }
 0x907   : > { %s3233_s25 = scalar_lea.hbm %s3339_s14, %s2155_s16  ;;  %p2607_p6 = pneg %p2606_p8 }
 0x908   : > { %p2613_p5 = por %p2612_p13, %p2611_p10 }
 0x90a   : > { %p2614_p11 = pnand %p2613_p5, %p2607_p6 }
 0x97b   : > { %v1890_v36 = vpop.xlane.xlu0 %1889 }
 0x97c   : > { %v1891_v37 = vmul.f32 0.03125, %v1890_v36 }
 0x97d   : > { %v1895_v38 = vpop.xlane.xlu1 %1894 }
 0x97e   : > { %v1897_v39 = vmul.f32 %v1891_v37, %v1891_v37  ;;  %v1896_v40 = vmul.f32 0.03125, %v1895_v38  ;;  %v1901_v43 = vsub.f32 %v1887_v32, %v1891_v37 }
 0x980   : > { %v1898_v41 = vsub.f32 %v1896_v40, %v1897_v39 }
 0x982   : > { %v1899_v42 = vadd.f32 1e-05, %v1898_v41 }
 0x984   : > { %2430 = vrsqrt.f32 %v1899_v42 }
 0x98e   : > { %v2431_v44 = vpop.eup %2430 }
 0x98f   : > { %v1902_v46 = vmul.f32 %v2431_v44, %v1901_v43 }
 0x991   : > { %v1910_v48 = vmul.f32 %v2151_v45, %v1902_v46 }
 0x993   : > { %v1918_v49 = vadd.f32 %v2152_v47, %v1910_v48 }
 0x995   : > { %1919 = vst.msk [vmem:[%s593_s4] sm:$0xff] %vm614_vm1, %v1918_v49 }
 0x996   : > { %2617 = shalt.err (!%p2614_p11)
}
 0x997   : > { %s2618_s2 = scalar_lea.hbm %s3233_s25, 128  ;;  %s2622_s17 = scalar_lea.hbm %s3339_s14, 256 }
 0x998   : > { %p2619_p9 = scmp.ne.s32.totalorder %s3233_s25, %s2618_s2  ;;  %p2623_p12 = scmp.lt.u32.totalorder %s3233_s25, %s3339_s14 }
 0x999   : > { %p2624_p2 = scmp.lt.u32.totalorder %s2622_s17, %s2618_s2  ;;  %p2626_p0 = scmp.lt.u32.totalorder %s2618_s2, %s3233_s25 }
 0x99a   : > { %p2620_p3 = pnand %p2619_p9, %p3336_p1 }
 0x99b   : > { %p2625_p4 = por %p2624_p2, %p2623_p12 }
 0x99c   : > { %p2621_p7 = pneg %p2620_p3 }
 0x99d   : > { %p2627_p8 = por %p2626_p0, %p2625_p4 }
 0x99f   : > { %p2628_p6 = pnand %p2627_p8, %p2621_p7 }
 0x9a1   : > { %2631 = shalt.err (!%p2628_p6)
}
 0x9a2   : > { %2327 = dma.vmem_to_hbm [thread:$0]  (%p3336_p1), %s3235_s26, 128, %s3233_s25, %s1921_s23  }
 0x9a3 PF: > { %s3340_s4 = sld [smem:[#allocation20_spill]]  ;;  %s3341_s28 = sld [smem:[#allocation21_spill]] }
 0x9a4   : > { %p3343_p13 = scmp.ge.s32.totalorder %s2686_s21, 2 }
 0x9a9   : > { %s1967_s29 = sand.u32 1, %s3340_s4   ;;  %p3342_p10 = scmp.ne.s32.totalorder %s3341_s28, 0 }
 0x9aa   : > { %s1968_s13 = scalar_lea.sflag [#allocation4], %s1967_s29 }
 0x9ab   : > { %p2349_p5 = pnand %p3343_p13, %p3342_p10 }
 0x9ad   : > { %2665 = dma.done.wait (!%p2349_p5), %s1968_s13, 128  }
 0x9ae   : > { %2667 = vsyncadd (!%p2349_p5), %s1968_s13, 4294967168  ;;  %s1977_s22 = scalar_lea.sflag [#allocation13], %s1967_s29 }
 0x9af   : > { %2669 = dma.done.wait (!%p2349_p5), %s1977_s22, 512  }
 0x9b0   : > { %2671 = vsyncadd (!%p2349_p5), %s1977_s22, 4294966784  ;;  %p36_p1 = scmp.ge.s32.totalorder %s2927_s12, 4   ;;  %s3344_s18 = smov %s2678_s19 }
 0x9b1   : > { %s3345_s19 = smov %s2682_s20  ;;  %s3346_s20 = smov %s2937_s11 }
 0x9b2   : > { %s3347_s21 = smov %s2927_s12  ;;  %38 = sbr.rel (!%p36_p1) target bundleno = 21 (0x15), region = 166 }
 0x9b9   :  { %1982 = vsyncpa [#allocation3], 1 }
 0x9ba   :  { %1984 = vsyncpa [#allocation3 + $0x1], 1 }
 0x9bb   :  { %1985 = vsyncpa [#allocation6], 1 }
 0x9bc   :  { %1987 = vsyncpa [#allocation6 + $0x1], 1 }
 0x9bd   :  { %1988 = vsyncpa [#allocation9], 1 }
 0x9be   :  { %1989 = vsyncpa [#allocation4], 1 }
 0x9bf   :  { %1991 = vsyncpa [#allocation4 + $0x1], 1 }
 0x9c0   :  { %1992 = vsyncpa [#allocation13], 1 }
 0x9c1   :  { %1994 = vsyncpa [#allocation13 + $0x1], 1 }

</bundles_post_ra>
